<compile_context>
chip_gen: v7x
topology: tpu7x:2x2x1
jax: 0.10.0
libtpu: 0.0.40
codegen_flags: <defaults>
</compile_context>

<pallas_src>
import math

import jax
import jax.numpy as jnp
from jax.experimental import pallas as pl
from jax.experimental.pallas import tpu as pltpu


def sum_combine_kernel(x_ref, w_ref, o_ref):
    # x_ref: (n_input, D, TN)     node-tile of all stacked inputs (one HBM->VMEM DMA per tile)
    # w_ref: (n_hop, n_input, TN) raw weights for every hop of this node tile
    # o_ref: (n_hop, D, TN)       outputs for every hop of this node tile
    n_hop = w_ref.shape[0]
    n_input = w_ref.shape[1]

    # n_hop is small & static for this module -> unrolled Python loop (LLO sees it all).
    for h in range(n_hop):
        w = w_ref[h]                                   # (n_input, TN), lane-dense

        # Numerically stable softmax over n_input, unrolled across sublane rows
        # (pure VPU; no last-axis / XLU lane reduction).
        m = w[0:1, :]
        for i in range(1, n_input):
            m = jnp.maximum(m, w[i:i + 1, :])
        exps = [jnp.exp(w[i:i + 1, :] - m) for i in range(n_input)]
        s = exps[0]
        for e in exps[1:]:
            s = s + e
        inv = pl.reciprocal(s, approx=True)            # EUP slot, otherwise idle here
        # Normalized weights: one (1, TN) vector per input, broadcast over the D
        # sublanes inside the MAC below (cheap sublane broadcast).
        wn = [e * inv for e in exps]

        # Unrolled weighted multiply-accumulate over n_input: one vmul + one vadd per input.
        # x_ref[i] is a cheap VMEM load (HBM DMA already happened once for this tile).
        acc = x_ref[0] * wn[0]                         # (D, TN)
        for i in range(1, n_input):
            acc = acc + x_ref[i] * wn[i]
        o_ref[h] = acc.astype(o_ref.dtype)


def _pick_node_tile(n_node, n_input, n_hop, d, *, bytes_per_el=4,
                    vmem_budget_bytes=24 * 1024 * 1024, max_lanes=512):
    """Node-tile (lane) width: a multiple of 128 that divides n_node and keeps the
    double-buffered X/W/out tiles inside a conservative VMEM budget.  Budget is sized
    against v7x's 64 MiB physical VMEM (with headroom); vmem_limit_bytes in the
    pallas_call raises v5e's 16 MiB scoped default.  max_lanes=512 keeps >=2 grid
    steps at typical sizes so DMA/compute overlap (measured: 512-wide tiles already
    reach ~85% of the HBM roofline for mem-bound elementwise work)."""
    if n_node % 128 != 0:
        return n_node                                  # full-extent lane block (== array dim)
    # 2x for double buffering; X + W + O tiles per lane.
    per_lane = 2 * bytes_per_el * (n_input * d + n_hop * n_input + n_hop * d)
    cap = min(n_node, max_lanes, max(128, vmem_budget_bytes // per_lane))
    tn = 128
    for cand in range(cap - cap % 128, 127, -128):     # largest multiple of 128 dividing n_node
        if n_node % cand == 0:
            tn = cand
            break
    return tn


def sum_combine(input_list, weight4d):
    """input_list: n_input arrays of (n_node, D); weight4d: (n_hop, n_node, 1, n_input).
    Returns (n_hop, n_node, D), identical to the PyTorch forward."""
    n_input = len(input_list)
    n_node, d = input_list[0].shape
    n_hop = weight4d.shape[0]

    # Lane-dense relayout (layout plumbing only): nodes go to the last / lane axis.
    # bf16 X would halve HBM read traffic on v6e/v7x (bf16 VPU); keep f32 for v5e portability.
    x = jnp.stack(input_list, axis=0)                          # (n_input, n_node, D)
    xt = jnp.transpose(x, (0, 2, 1)).astype(jnp.float32)       # (n_input, D, n_node)
    wt = jnp.transpose(weight4d[:, :, 0, :], (0, 2, 1))        # (n_hop, n_input, n_node)
    wt = wt.astype(jnp.float32)

    tn = _pick_node_tile(n_node, n_input, n_hop, d)

    out_t = pl.pallas_call(
        sum_combine_kernel,
        out_shape=jax.ShapeDtypeStruct((n_hop, d, n_node), jnp.float32),
        grid=(n_node // tn,),                                  # 1-D grid over node tiles
        in_specs=[
            pl.BlockSpec((n_input, d, tn), lambda n: (0, 0, n)),      # X: one DMA per node tile
            pl.BlockSpec((n_hop, n_input, tn), lambda n: (0, 0, n)),  # W: all hops at once
        ],
        out_specs=pl.BlockSpec((n_hop, d, tn), lambda n: (0, 0, n)),  # O: all hops at once
        compiler_params=pltpu.CompilerParams(
            dimension_semantics=("parallel",),                 # node axis feeds v7x megacore
            vmem_limit_bytes=48 * 1024 * 1024,                 # > v5e 16 MiB default, < v7x 64 MiB
        ),
    )(xt, wt)
    # Back to the PyTorch output layout (n_hop, n_node, D).
    return jnp.transpose(out_t, (0, 2, 1))


def xavier_uniform(key, shape):
    # Matches torch.nn.init.xavier_uniform_ for a 4D tensor (n_hop, n_node, 1, n_input).
    receptive = 1
    for s in shape[2:]:
        receptive *= s
    fan_in = shape[1] * receptive
    fan_out = shape[0] * receptive
    bound = math.sqrt(3.0) * math.sqrt(2.0 / (fan_in + fan_out))
    return jax.random.uniform(key, shape, jnp.float32, minval=-bound, maxval=bound)


def reference(input_list, weight4d):
    # Pure-JAX mirror of the PyTorch forward.
    n_hop = weight4d.shape[0]
    hiddens = jnp.stack(input_list, axis=2)[None]              # (1, n_node, D, n_input)
    hiddens = jnp.broadcast_to(hiddens, (n_hop,) + hiddens.shape[1:])
    w = jax.nn.softmax(weight4d, axis=3)                       # (n_hop, n_node, 1, n_input)
    return (hiddens * w).sum(axis=3)                           # (n_hop, n_node, D)


if __name__ == "__main__":
    n_hop, n_node, n_input, D = 3, 1024, 4, 32

    key = jax.random.PRNGKey(0)
    k_w, k_x = jax.random.split(key)

    # Parameter: nn.Parameter(torch.empty(n_hop, n_node, 1, n_input)) + xavier_uniform_
    weight4d = xavier_uniform(k_w, (n_hop, n_node, 1, n_input))

    # input_list: n_input tensors of shape (n_node, D)
    xs = jax.random.normal(k_x, (n_input, n_node, D), jnp.float32)
    input_list = [xs[i] for i in range(n_input)]

    out = jax.jit(sum_combine)(input_list, weight4d)
    out = jax.block_until_ready(out)

    ref = reference(input_list, weight4d)
    assert out.shape == (n_hop, n_node, D)
    # Tolerance covers pl.reciprocal(approx=True) in the softmax denominator.
    assert jnp.allclose(out, ref, atol=2e-3, rtol=2e-3), float(jnp.max(jnp.abs(out - ref)))

    print("KERNEL_OK")
</pallas_src>

<mosaic_0001>
module attributes {stable_mosaic.version = 11 : i64} {
  func.func @sum_combine_kernel(%arg0: i32, %arg1: memref<4x32x512xf32, #tpu.memory_space<vmem>>, %arg2: memref<3x4x512xf32, #tpu.memory_space<vmem>>, %arg3: memref<3x32x512xf32, #tpu.memory_space<vmem>>) attributes {dimension_semantics = [#tpu.dimension_semantics<parallel>], iteration_bounds = array<i64: 2>, scalar_prefetch = 0 : i64, scratch_operands = 0 : i64, tpu.core_type = #tpu.core_type<tc>, window_params = [{transform_indices = @transform_0, window_bounds = array<i64: 4, 32, 512>}, {transform_indices = @transform_1, window_bounds = array<i64: 3, 4, 512>}, {transform_indices = @transform_2, window_bounds = array<i64: 3, 32, 512>}]} {
    %c0 = arith.constant 0 : index
    %c0_0 = arith.constant 0 : index
    %c0_1 = arith.constant 0 : index
    %0 = vector.load %arg2[%c0, %c0_0, %c0_1] : memref<3x4x512xf32, #tpu.memory_space<vmem>>, vector<1x4x512xf32>
    %1 = vector.shape_cast %0 : vector<1x4x512xf32> to vector<4x512xf32>
    %2 = vector.extract_strided_slice %1 {offsets = [0, 0], sizes = [1, 512], strides = [1, 1]} : vector<4x512xf32> to vector<1x512xf32>
    %3 = vector.extract_strided_slice %1 {offsets = [1, 0], sizes = [1, 512], strides = [1, 1]} : vector<4x512xf32> to vector<1x512xf32>
    %4 = arith.maximumf %2, %3 : vector<1x512xf32>
    %5 = vector.extract_strided_slice %1 {offsets = [2, 0], sizes = [1, 512], strides = [1, 1]} : vector<4x512xf32> to vector<1x512xf32>
    %6 = arith.maximumf %4, %5 : vector<1x512xf32>
    %7 = vector.extract_strided_slice %1 {offsets = [3, 0], sizes = [1, 512], strides = [1, 1]} : vector<4x512xf32> to vector<1x512xf32>
    %8 = arith.maximumf %6, %7 : vector<1x512xf32>
    %9 = vector.extract_strided_slice %1 {offsets = [0, 0], sizes = [1, 512], strides = [1, 1]} : vector<4x512xf32> to vector<1x512xf32>
    %10 = arith.subf %9, %8 : vector<1x512xf32>
    %11 = math.exp %10 : vector<1x512xf32>
    %12 = vector.extract_strided_slice %1 {offsets = [1, 0], sizes = [1, 512], strides = [1, 1]} : vector<4x512xf32> to vector<1x512xf32>
    %13 = arith.subf %12, %8 : vector<1x512xf32>
    %14 = math.exp %13 : vector<1x512xf32>
    %15 = vector.extract_strided_slice %1 {offsets = [2, 0], sizes = [1, 512], strides = [1, 1]} : vector<4x512xf32> to vector<1x512xf32>
    %16 = arith.subf %15, %8 : vector<1x512xf32>
    %17 = math.exp %16 : vector<1x512xf32>
    %18 = vector.extract_strided_slice %1 {offsets = [3, 0], sizes = [1, 512], strides = [1, 1]} : vector<4x512xf32> to vector<1x512xf32>
    %19 = arith.subf %18, %8 : vector<1x512xf32>
    %20 = math.exp %19 : vector<1x512xf32>
    %21 = arith.addf %11, %14 : vector<1x512xf32>
    %22 = arith.addf %21, %17 : vector<1x512xf32>
    %23 = arith.addf %22, %20 : vector<1x512xf32>
    %24 = tpu.reciprocal %23 {approx = true} : vector<1x512xf32> -> vector<1x512xf32>
    %25 = arith.mulf %11, %24 : vector<1x512xf32>
    %26 = arith.mulf %14, %24 : vector<1x512xf32>
    %27 = arith.mulf %17, %24 : vector<1x512xf32>
    %28 = arith.mulf %20, %24 : vector<1x512xf32>
    %c0_2 = arith.constant 0 : index
    %c0_3 = arith.constant 0 : index
    %c0_4 = arith.constant 0 : index
    %29 = vector.load %arg1[%c0_2, %c0_3, %c0_4] : memref<4x32x512xf32, #tpu.memory_space<vmem>>, vector<1x32x512xf32>
    %30 = vector.shape_cast %29 : vector<1x32x512xf32> to vector<32x512xf32>
    %31 = vector.broadcast %25 : vector<1x512xf32> to vector<32x512xf32>
    %32 = arith.mulf %30, %31 : vector<32x512xf32>
    %c1 = arith.constant 1 : index
    %c0_5 = arith.constant 0 : index
    %c0_6 = arith.constant 0 : index
    %33 = vector.load %arg1[%c1, %c0_5, %c0_6] : memref<4x32x512xf32, #tpu.memory_space<vmem>>, vector<1x32x512xf32>
    %34 = vector.shape_cast %33 : vector<1x32x512xf32> to vector<32x512xf32>
    %35 = vector.broadcast %26 : vector<1x512xf32> to vector<32x512xf32>
    %36 = arith.mulf %34, %35 : vector<32x512xf32>
    %37 = arith.addf %32, %36 : vector<32x512xf32>
    %c2 = arith.constant 2 : index
    %c0_7 = arith.constant 0 : index
    %c0_8 = arith.constant 0 : index
    %38 = vector.load %arg1[%c2, %c0_7, %c0_8] : memref<4x32x512xf32, #tpu.memory_space<vmem>>, vector<1x32x512xf32>
    %39 = vector.shape_cast %38 : vector<1x32x512xf32> to vector<32x512xf32>
    %40 = vector.broadcast %27 : vector<1x512xf32> to vector<32x512xf32>
    %41 = arith.mulf %39, %40 : vector<32x512xf32>
    %42 = arith.addf %37, %41 : vector<32x512xf32>
    %c3 = arith.constant 3 : index
    %c0_9 = arith.constant 0 : index
    %c0_10 = arith.constant 0 : index
    %43 = vector.load %arg1[%c3, %c0_9, %c0_10] : memref<4x32x512xf32, #tpu.memory_space<vmem>>, vector<1x32x512xf32>
    %44 = vector.shape_cast %43 : vector<1x32x512xf32> to vector<32x512xf32>
    %45 = vector.broadcast %28 : vector<1x512xf32> to vector<32x512xf32>
    %46 = arith.mulf %44, %45 : vector<32x512xf32>
    %47 = arith.addf %42, %46 : vector<32x512xf32>
    %c0_11 = arith.constant 0 : index
    %c0_12 = arith.constant 0 : index
    %c0_13 = arith.constant 0 : index
    %48 = vector.load %arg3[%c0_11, %c0_12, %c0_13] : memref<3x32x512xf32, #tpu.memory_space<vmem>>, vector<1x32x512xf32>
    %49 = vector.shape_cast %48 : vector<1x32x512xf32> to vector<32x512xf32>
    %50 = vector.shape_cast %47 : vector<32x512xf32> to vector<1x32x512xf32>
    tpu.vector_store %arg3[%c0_11, %c0_12, %c0_13], %50 {strides = array<i32>} : memref<3x32x512xf32, #tpu.memory_space<vmem>>, vector<1x32x512xf32>,
    %c1_14 = arith.constant 1 : index
    %c0_15 = arith.constant 0 : index
    %c0_16 = arith.constant 0 : index
    %51 = vector.load %arg2[%c1_14, %c0_15, %c0_16] : memref<3x4x512xf32, #tpu.memory_space<vmem>>, vector<1x4x512xf32>
    %52 = vector.shape_cast %51 : vector<1x4x512xf32> to vector<4x512xf32>
    %53 = vector.extract_strided_slice %52 {offsets = [0, 0], sizes = [1, 512], strides = [1, 1]} : vector<4x512xf32> to vector<1x512xf32>
    %54 = vector.extract_strided_slice %52 {offsets = [1, 0], sizes = [1, 512], strides = [1, 1]} : vector<4x512xf32> to vector<1x512xf32>
    %55 = arith.maximumf %53, %54 : vector<1x512xf32>
    %56 = vector.extract_strided_slice %52 {offsets = [2, 0], sizes = [1, 512], strides = [1, 1]} : vector<4x512xf32> to vector<1x512xf32>
    %57 = arith.maximumf %55, %56 : vector<1x512xf32>
    %58 = vector.extract_strided_slice %52 {offsets = [3, 0], sizes = [1, 512], strides = [1, 1]} : vector<4x512xf32> to vector<1x512xf32>
    %59 = arith.maximumf %57, %58 : vector<1x512xf32>
    %60 = vector.extract_strided_slice %52 {offsets = [0, 0], sizes = [1, 512], strides = [1, 1]} : vector<4x512xf32> to vector<1x512xf32>
    %61 = arith.subf %60, %59 : vector<1x512xf32>
    %62 = math.exp %61 : vector<1x512xf32>
    %63 = vector.extract_strided_slice %52 {offsets = [1, 0], sizes = [1, 512], strides = [1, 1]} : vector<4x512xf32> to vector<1x512xf32>
    %64 = arith.subf %63, %59 : vector<1x512xf32>
    %65 = math.exp %64 : vector<1x512xf32>
    %66 = vector.extract_strided_slice %52 {offsets = [2, 0], sizes = [1, 512], strides = [1, 1]} : vector<4x512xf32> to vector<1x512xf32>
    %67 = arith.subf %66, %59 : vector<1x512xf32>
    %68 = math.exp %67 : vector<1x512xf32>
    %69 = vector.extract_strided_slice %52 {offsets = [3, 0], sizes = [1, 512], strides = [1, 1]} : vector<4x512xf32> to vector<1x512xf32>
    %70 = arith.subf %69, %59 : vector<1x512xf32>
    %71 = math.exp %70 : vector<1x512xf32>
    %72 = arith.addf %62, %65 : vector<1x512xf32>
    %73 = arith.addf %72, %68 : vector<1x512xf32>
    %74 = arith.addf %73, %71 : vector<1x512xf32>
    %75 = tpu.reciprocal %74 {approx = true} : vector<1x512xf32> -> vector<1x512xf32>
    %76 = arith.mulf %62, %75 : vector<1x512xf32>
    %77 = arith.mulf %65, %75 : vector<1x512xf32>
    %78 = arith.mulf %68, %75 : vector<1x512xf32>
    %79 = arith.mulf %71, %75 : vector<1x512xf32>
    %c0_17 = arith.constant 0 : index
    %c0_18 = arith.constant 0 : index
    %c0_19 = arith.constant 0 : index
    %80 = vector.load %arg1[%c0_17, %c0_18, %c0_19] : memref<4x32x512xf32, #tpu.memory_space<vmem>>, vector<1x32x512xf32>
    %81 = vector.shape_cast %80 : vector<1x32x512xf32> to vector<32x512xf32>
    %82 = vector.broadcast %76 : vector<1x512xf32> to vector<32x512xf32>
    %83 = arith.mulf %81, %82 : vector<32x512xf32>
    %c1_20 = arith.constant 1 : index
    %c0_21 = arith.constant 0 : index
    %c0_22 = arith.constant 0 : index
    %84 = vector.load %arg1[%c1_20, %c0_21, %c0_22] : memref<4x32x512xf32, #tpu.memory_space<vmem>>, vector<1x32x512xf32>
    %85 = vector.shape_cast %84 : vector<1x32x512xf32> to vector<32x512xf32>
    %86 = vector.broadcast %77 : vector<1x512xf32> to vector<32x512xf32>
    %87 = arith.mulf %85, %86 : vector<32x512xf32>
    %88 = arith.addf %83, %87 : vector<32x512xf32>
    %c2_23 = arith.constant 2 : index
    %c0_24 = arith.constant 0 : index
    %c0_25 = arith.constant 0 : index
    %89 = vector.load %arg1[%c2_23, %c0_24, %c0_25] : memref<4x32x512xf32, #tpu.memory_space<vmem>>, vector<1x32x512xf32>
    %90 = vector.shape_cast %89 : vector<1x32x512xf32> to vector<32x512xf32>
    %91 = vector.broadcast %78 : vector<1x512xf32> to vector<32x512xf32>
    %92 = arith.mulf %90, %91 : vector<32x512xf32>
    %93 = arith.addf %88, %92 : vector<32x512xf32>
    %c3_26 = arith.constant 3 : index
    %c0_27 = arith.constant 0 : index
    %c0_28 = arith.constant 0 : index
    %94 = vector.load %arg1[%c3_26, %c0_27, %c0_28] : memref<4x32x512xf32, #tpu.memory_space<vmem>>, vector<1x32x512xf32>
    %95 = vector.shape_cast %94 : vector<1x32x512xf32> to vector<32x512xf32>
    %96 = vector.broadcast %79 : vector<1x512xf32> to vector<32x512xf32>
    %97 = arith.mulf %95, %96 : vector<32x512xf32>
    %98 = arith.addf %93, %97 : vector<32x512xf32>
    %c1_29 = arith.constant 1 : index
    %c0_30 = arith.constant 0 : index
    %c0_31 = arith.constant 0 : index
    %99 = vector.load %arg3[%c1_29, %c0_30, %c0_31] : memref<3x32x512xf32, #tpu.memory_space<vmem>>, vector<1x32x512xf32>
    %100 = vector.shape_cast %99 : vector<1x32x512xf32> to vector<32x512xf32>
    %101 = vector.shape_cast %98 : vector<32x512xf32> to vector<1x32x512xf32>
    tpu.vector_store %arg3[%c1_29, %c0_30, %c0_31], %101 {strides = array<i32>} : memref<3x32x512xf32, #tpu.memory_space<vmem>>, vector<1x32x512xf32>,
    %c2_32 = arith.constant 2 : index
    %c0_33 = arith.constant 0 : index
    %c0_34 = arith.constant 0 : index
    %102 = vector.load %arg2[%c2_32, %c0_33, %c0_34] : memref<3x4x512xf32, #tpu.memory_space<vmem>>, vector<1x4x512xf32>
    %103 = vector.shape_cast %102 : vector<1x4x512xf32> to vector<4x512xf32>
    %104 = vector.extract_strided_slice %103 {offsets = [0, 0], sizes = [1, 512], strides = [1, 1]} : vector<4x512xf32> to vector<1x512xf32>
    %105 = vector.extract_strided_slice %103 {offsets = [1, 0], sizes = [1, 512], strides = [1, 1]} : vector<4x512xf32> to vector<1x512xf32>
    %106 = arith.maximumf %104, %105 : vector<1x512xf32>
    %107 = vector.extract_strided_slice %103 {offsets = [2, 0], sizes = [1, 512], strides = [1, 1]} : vector<4x512xf32> to vector<1x512xf32>
    %108 = arith.maximumf %106, %107 : vector<1x512xf32>
    %109 = vector.extract_strided_slice %103 {offsets = [3, 0], sizes = [1, 512], strides = [1, 1]} : vector<4x512xf32> to vector<1x512xf32>
    %110 = arith.maximumf %108, %109 : vector<1x512xf32>
    %111 = vector.extract_strided_slice %103 {offsets = [0, 0], sizes = [1, 512], strides = [1, 1]} : vector<4x512xf32> to vector<1x512xf32>
    %112 = arith.subf %111, %110 : vector<1x512xf32>
    %113 = math.exp %112 : vector<1x512xf32>
    %114 = vector.extract_strided_slice %103 {offsets = [1, 0], sizes = [1, 512], strides = [1, 1]} : vector<4x512xf32> to vector<1x512xf32>
    %115 = arith.subf %114, %110 : vector<1x512xf32>
    %116 = math.exp %115 : vector<1x512xf32>
    %117 = vector.extract_strided_slice %103 {offsets = [2, 0], sizes = [1, 512], strides = [1, 1]} : vector<4x512xf32> to vector<1x512xf32>
    %118 = arith.subf %117, %110 : vector<1x512xf32>
    %119 = math.exp %118 : vector<1x512xf32>
    %120 = vector.extract_strided_slice %103 {offsets = [3, 0], sizes = [1, 512], strides = [1, 1]} : vector<4x512xf32> to vector<1x512xf32>
    %121 = arith.subf %120, %110 : vector<1x512xf32>
    %122 = math.exp %121 : vector<1x512xf32>
    %123 = arith.addf %113, %116 : vector<1x512xf32>
    %124 = arith.addf %123, %119 : vector<1x512xf32>
    %125 = arith.addf %124, %122 : vector<1x512xf32>
    %126 = tpu.reciprocal %125 {approx = true} : vector<1x512xf32> -> vector<1x512xf32>
    %127 = arith.mulf %113, %126 : vector<1x512xf32>
    %128 = arith.mulf %116, %126 : vector<1x512xf32>
    %129 = arith.mulf %119, %126 : vector<1x512xf32>
    %130 = arith.mulf %122, %126 : vector<1x512xf32>
    %c0_35 = arith.constant 0 : index
    %c0_36 = arith.constant 0 : index
    %c0_37 = arith.constant 0 : index
    %131 = vector.load %arg1[%c0_35, %c0_36, %c0_37] : memref<4x32x512xf32, #tpu.memory_space<vmem>>, vector<1x32x512xf32>
    %132 = vector.shape_cast %131 : vector<1x32x512xf32> to vector<32x512xf32>
    %133 = vector.broadcast %127 : vector<1x512xf32> to vector<32x512xf32>
    %134 = arith.mulf %132, %133 : vector<32x512xf32>
    %c1_38 = arith.constant 1 : index
    %c0_39 = arith.constant 0 : index
    %c0_40 = arith.constant 0 : index
    %135 = vector.load %arg1[%c1_38, %c0_39, %c0_40] : memref<4x32x512xf32, #tpu.memory_space<vmem>>, vector<1x32x512xf32>
    %136 = vector.shape_cast %135 : vector<1x32x512xf32> to vector<32x512xf32>
    %137 = vector.broadcast %128 : vector<1x512xf32> to vector<32x512xf32>
    %138 = arith.mulf %136, %137 : vector<32x512xf32>
    %139 = arith.addf %134, %138 : vector<32x512xf32>
    %c2_41 = arith.constant 2 : index
    %c0_42 = arith.constant 0 : index
    %c0_43 = arith.constant 0 : index
    %140 = vector.load %arg1[%c2_41, %c0_42, %c0_43] : memref<4x32x512xf32, #tpu.memory_space<vmem>>, vector<1x32x512xf32>
    %141 = vector.shape_cast %140 : vector<1x32x512xf32> to vector<32x512xf32>
    %142 = vector.broadcast %129 : vector<1x512xf32> to vector<32x512xf32>
    %143 = arith.mulf %141, %142 : vector<32x512xf32>
    %144 = arith.addf %139, %143 : vector<32x512xf32>
    %c3_44 = arith.constant 3 : index
    %c0_45 = arith.constant 0 : index
    %c0_46 = arith.constant 0 : index
    %145 = vector.load %arg1[%c3_44, %c0_45, %c0_46] : memref<4x32x512xf32, #tpu.memory_space<vmem>>, vector<1x32x512xf32>
    %146 = vector.shape_cast %145 : vector<1x32x512xf32> to vector<32x512xf32>
    %147 = vector.broadcast %130 : vector<1x512xf32> to vector<32x512xf32>
    %148 = arith.mulf %146, %147 : vector<32x512xf32>
    %149 = arith.addf %144, %148 : vector<32x512xf32>
    %c2_47 = arith.constant 2 : index
    %c0_48 = arith.constant 0 : index
    %c0_49 = arith.constant 0 : index
    %150 = vector.load %arg3[%c2_47, %c0_48, %c0_49] : memref<3x32x512xf32, #tpu.memory_space<vmem>>, vector<1x32x512xf32>
    %151 = vector.shape_cast %150 : vector<1x32x512xf32> to vector<32x512xf32>
    %152 = vector.shape_cast %149 : vector<32x512xf32> to vector<1x32x512xf32>
    tpu.vector_store %arg3[%c2_47, %c0_48, %c0_49], %152 {strides = array<i32>} : memref<3x32x512xf32, #tpu.memory_space<vmem>>, vector<1x32x512xf32>,
    return
  }
  func.func @transform_0(%arg0: i32) -> (i32, i32, i32) {
    %c0_i32 = arith.constant 0 : i32
    %c0_i32_0 = arith.constant 0 : i32
    %c0_i32_1 = arith.constant 0 : i32
    return %c0_i32, %c0_i32_0, %arg0 : i32, i32, i32
  }
  func.func @transform_1(%arg0: i32) -> (i32, i32, i32) {
    %c0_i32 = arith.constant 0 : i32
    %c0_i32_0 = arith.constant 0 : i32
    %c0_i32_1 = arith.constant 0 : i32
    return %c0_i32, %c0_i32_0, %arg0 : i32, i32, i32
  }
  func.func @transform_2(%arg0: i32) -> (i32, i32, i32) {
    %c0_i32 = arith.constant 0 : i32
    %c0_i32_0 = arith.constant 0 : i32
    %c0_i32_1 = arith.constant 0 : i32
    return %c0_i32, %c0_i32_0, %arg0 : i32, i32, i32
  }
}

</mosaic_0001>

<bundles_post_ra>
// kernel: sum_combine.1
= control target key start
LH: loop header
LB: loop body
LE: loop exit
PB: predicated region body
PF: predicated region fallthrough
CT: control target
= control target key end

     0   :  { %7 = vsyncpa [#allocation5], 0  ;;  %s3533_s0 = inlined_call_operand.vmem [shape: f32[4,32,1024], index: 0, kind: input, shape index: {}]   ;;  %s3534_s1 = inlined_call_operand.vmem [shape: f32[3,4,1024], index: 1, kind: input, shape index: {}]   ;;  %s3535_s2 = inlined_call_operand.hbm [shape: f32[3,32,1024], index: 2, kind: output, shape index: {}]  }
   0x1   :  { %9 = vsyncpa [#allocation5 + $0x1], 0  ;;  %s2261_s9 = smov 0   ;;  %s2263_s10 = smov 0  }
   0x2   :  { %s2265_s11 = smov 0   ;;  %s2267_s12 = smov 0  }
   0x3 LB: > { %s1839_s13 = sadd.s32 4294967295, %s2240_s12   ;;  %s1840_s14 = sadd.s32 4294967294, %s2240_s12   ;;  %s2240_s12 = sphi %s2267_s12, %s3735_s12   ;;  %s2236_s11 = sphi %s2265_s11, %s3734_s11   ;;  %s2232_s10 = sphi %s2263_s10, %s3733_s10   ;;  %s2228_s9 = sphi %s2261_s9, %s3732_s9  }
   0x4   : > { %s2284_s15 = sadd.s32 1, %s2240_s12   ;;  %s22_s16 = sadd.s32 1, %s2236_s11 }
   0x5   : > { %s19_s17 = ssub.s32 %s2240_s12, %s2284_s15  ;;  %p29_p0 = scmp.ne.s32.totalorder %s2236_s11, %s2232_s10 }
   0x6   : > { %p20_p1 = scmp.eq.s32.totalorder %s19_s17, 0  ;;  %p30_p2 = scmp.eq.s32.totalorder %s2240_s12, 0 }
   0x7   : > { %p85_p3 = scmp.eq.s32.totalorder %s1839_s13, 1  ;;  %p90_p4 = scmp.ne.s32.totalorder %s2232_s10, %s2228_s9 }
   0x8   : > { %s2297_s18 = scalar_select %p20_p1, %s2236_s11, %s22_s16  }
   0x9   : > { %p2299_p5 = por %p30_p2, %p29_p0  ;;  %p2303_p6 = por %p85_p3, %p29_p0 }
   0xa   : > { %p91_p7 = scmp.eq.s32.totalorder %s1840_s14, 1  ;;  %p1842_p9 = scmp.ge.s32.totalorder %s2240_s12, 2 }
   0xc   : > { %p2307_p8 = por %p91_p7, %p90_p4  ;;  %107 = sbr.rel (%p1842_p9) target bundleno = 62 (0x3e), region = 16 }
  0x13   : > { %110 = sbr.rel (!%p2299_p5) target bundleno = 55 (0x37), region = 20  ;;  %s112_s22 = sand.u32 (%p2299_p5), 1, %s2236_s11  }
  0x14   : > { %s2070_s23 = sshll.u32 (%p2299_p5), %s2240_s12, 5  ;;  %s1843_s24 = sshll.u32 (%p2299_p5), %s112_s22, 9 }
  0x15   : > { %s2321_s27 = scalar_lea.vmem (%p2299_p5), %s3533_s0, %s2070_s23  ;;  %s2326_s28 = scalar_lea.vmem (%p2299_p5), [#allocation2], %s1843_s24 }
  0x16   : > { %v130_v0 = vld [vmem:[%s2321_s27] sm:$0xff] (%p2299_p5)  ;;  %v132_v1 = vld [vmem:[%s2321_s27 + $0x8] sm:$0xff] (%p2299_p5)  ;;  %v134_v2 = vld [vmem:[%s2321_s27 + $0x10] sm:$0xff] (%p2299_p5) }
  0x17   : > { %131 = vst [vmem:[%s2326_s28] sm:$0xff] (%p2299_p5), %v130_v0  ;;  %133 = vst [vmem:[%s2326_s28 + $0x8] sm:$0xff] (%p2299_p5), %v132_v1  ;;  %v136_v3 = vld [vmem:[%s2321_s27 + $0x18] sm:$0xff] (%p2299_p5)  ;;  %v138_v4 = vld [vmem:[%s2321_s27 + $0x40] sm:$0xff] (%p2299_p5) }
  0x18   : > { %135 = vst [vmem:[%s2326_s28 + $0x10] sm:$0xff] (%p2299_p5), %v134_v2  ;;  %v140_v5 = vld [vmem:[%s2321_s27 + $0x48] sm:$0xff] (%p2299_p5)  ;;  %137 = vst [vmem:[%s2326_s28 + $0x18] sm:$0xff] (%p2299_p5), %v136_v3  ;;  %v142_v6 = vld [vmem:[%s2321_s27 + $0x50] sm:$0xff] (%p2299_p5) }
  0x19   : > { %139 = vst [vmem:[%s2326_s28 + $0x20] sm:$0xff] (%p2299_p5), %v138_v4  ;;  %141 = vst [vmem:[%s2326_s28 + $0x28] sm:$0xff] (%p2299_p5), %v140_v5  ;;  %v144_v7 = vld [vmem:[%s2321_s27 + $0x58] sm:$0xff] (%p2299_p5)  ;;  %v146_v8 = vld [vmem:[%s2321_s27 + $0x80] sm:$0xff] (%p2299_p5) }
  0x1a   : > { %143 = vst [vmem:[%s2326_s28 + $0x30] sm:$0xff] %v142_v6  ;;  %145 = vst [vmem:[%s2326_s28 + $0x38] sm:$0xff] %v144_v7  ;;  %v148_v9 = vld [vmem:[%s2321_s27 + $0x88] sm:$0xff]  ;;  %v150_v10 = vld [vmem:[%s2321_s27 + $0x90] sm:$0xff] }
  0x1b   : > { %147 = vst [vmem:[%s2326_s28 + $0x40] sm:$0xff] %v146_v8  ;;  %v152_v11 = vld [vmem:[%s2321_s27 + $0x98] sm:$0xff]  ;;  %149 = vst [vmem:[%s2326_s28 + $0x48] sm:$0xff] %v148_v9  ;;  %v154_v12 = vld [vmem:[%s2321_s27 + $0xc0] sm:$0xff] }
  0x1c   : > { %151 = vst [vmem:[%s2326_s28 + $0x50] sm:$0xff] %v150_v10  ;;  %153 = vst [vmem:[%s2326_s28 + $0x58] sm:$0xff] %v152_v11  ;;  %v156_v13 = vld [vmem:[%s2321_s27 + $0xc8] sm:$0xff]  ;;  %v158_v14 = vld [vmem:[%s2321_s27 + $0xd0] sm:$0xff] }
  0x1d   : > { %155 = vst [vmem:[%s2326_s28 + $0x60] sm:$0xff] %v154_v12  ;;  %157 = vst [vmem:[%s2326_s28 + $0x68] sm:$0xff] %v156_v13  ;;  %v160_v15 = vld [vmem:[%s2321_s27 + $0xd8] sm:$0xff]  ;;  %v162_v16 = vld [vmem:[%s2321_s27 + $0x100] sm:$0xff] }
  0x1e   : > { %159 = vst [vmem:[%s2326_s28 + $0x70] sm:$0xff] %v158_v14  ;;  %v164_v17 = vld [vmem:[%s2321_s27 + $0x108] sm:$0xff]  ;;  %161 = vst [vmem:[%s2326_s28 + $0x78] sm:$0xff] %v160_v15  ;;  %v166_v18 = vld [vmem:[%s2321_s27 + $0x110] sm:$0xff] }
  0x1f   : > { %163 = vst [vmem:[%s2326_s28 + $0x80] sm:$0xff] %v162_v16  ;;  %165 = vst [vmem:[%s2326_s28 + $0x88] sm:$0xff] %v164_v17  ;;  %v168_v19 = vld [vmem:[%s2321_s27 + $0x118] sm:$0xff]  ;;  %v170_v20 = vld [vmem:[%s2321_s27 + $0x140] sm:$0xff] }
  0x20   : > { %167 = vst [vmem:[%s2326_s28 + $0x90] sm:$0xff] %v166_v18  ;;  %169 = vst [vmem:[%s2326_s28 + $0x98] sm:$0xff] %v168_v19  ;;  %v172_v21 = vld [vmem:[%s2321_s27 + $0x148] sm:$0xff]  ;;  %v174_v22 = vld [vmem:[%s2321_s27 + $0x150] sm:$0xff] }
  0x21   : > { %171 = vst [vmem:[%s2326_s28 + $0xa0] sm:$0xff] %v170_v20  ;;  %v176_v23 = vld [vmem:[%s2321_s27 + $0x158] sm:$0xff]  ;;  %173 = vst [vmem:[%s2326_s28 + $0xa8] sm:$0xff] %v172_v21  ;;  %v178_v24 = vld [vmem:[%s2321_s27 + $0x180] sm:$0xff] }
  0x22   : > { %175 = vst [vmem:[%s2326_s28 + $0xb0] sm:$0xff] %v174_v22  ;;  %177 = vst [vmem:[%s2326_s28 + $0xb8] sm:$0xff] %v176_v23  ;;  %v180_v25 = vld [vmem:[%s2321_s27 + $0x188] sm:$0xff]  ;;  %v182_v26 = vld [vmem:[%s2321_s27 + $0x190] sm:$0xff] }
  0x23   : > { %179 = vst [vmem:[%s2326_s28 + $0xc0] sm:$0xff] %v178_v24  ;;  %181 = vst [vmem:[%s2326_s28 + $0xc8] sm:$0xff] %v180_v25  ;;  %v184_v27 = vld [vmem:[%s2321_s27 + $0x198] sm:$0xff]  ;;  %v186_v28 = vld [vmem:[%s2321_s27 + $0x1c0] sm:$0xff] }
  0x24   : > { %183 = vst [vmem:[%s2326_s28 + $0xd0] sm:$0xff] %v182_v26  ;;  %v188_v29 = vld [vmem:[%s2321_s27 + $0x1c8] sm:$0xff]  ;;  %185 = vst [vmem:[%s2326_s28 + $0xd8] sm:$0xff] %v184_v27  ;;  %v190_v30 = vld [vmem:[%s2321_s27 + $0x1d0] sm:$0xff] }
  0x25   : > { %187 = vst [vmem:[%s2326_s28 + $0xe0] sm:$0xff] %v186_v28  ;;  %189 = vst [vmem:[%s2326_s28 + $0xe8] sm:$0xff] %v188_v29  ;;  %v192_v31 = vld [vmem:[%s2321_s27 + $0x1d8] sm:$0xff]  ;;  %v194_v32 = vld [vmem:[%s2321_s27 + $0x200] sm:$0xff] }
  0x26   : > { %191 = vst [vmem:[%s2326_s28 + $0xf0] sm:$0xff] %v190_v30  ;;  %193 = vst [vmem:[%s2326_s28 + $0xf8] sm:$0xff] %v192_v31  ;;  %v196_v33 = vld [vmem:[%s2321_s27 + $0x208] sm:$0xff]  ;;  %v198_v34 = vld [vmem:[%s2321_s27 + $0x210] sm:$0xff] }
  0x27   : > { %195 = vst [vmem:[%s2326_s28 + $0x100] sm:$0xff] %v194_v32  ;;  %v200_v35 = vld [vmem:[%s2321_s27 + $0x218] sm:$0xff]  ;;  %197 = vst [vmem:[%s2326_s28 + $0x108] sm:$0xff] %v196_v33  ;;  %v202_v36 = vld [vmem:[%s2321_s27 + $0x240] sm:$0xff] }
  0x28   : > { %199 = vst [vmem:[%s2326_s28 + $0x110] sm:$0xff] %v198_v34  ;;  %201 = vst [vmem:[%s2326_s28 + $0x118] sm:$0xff] %v200_v35  ;;  %v204_v37 = vld [vmem:[%s2321_s27 + $0x248] sm:$0xff]  ;;  %v206_v38 = vld [vmem:[%s2321_s27 + $0x250] sm:$0xff] }
  0x29   : > { %203 = vst [vmem:[%s2326_s28 + $0x120] sm:$0xff] %v202_v36  ;;  %205 = vst [vmem:[%s2326_s28 + $0x128] sm:$0xff] %v204_v37  ;;  %v208_v39 = vld [vmem:[%s2321_s27 + $0x258] sm:$0xff]  ;;  %v210_v40 = vld [vmem:[%s2321_s27 + $0x280] sm:$0xff] }
  0x2a   : > { %207 = vst [vmem:[%s2326_s28 + $0x130] sm:$0xff] %v206_v38  ;;  %v212_v41 = vld [vmem:[%s2321_s27 + $0x288] sm:$0xff]  ;;  %209 = vst [vmem:[%s2326_s28 + $0x138] sm:$0xff] %v208_v39  ;;  %v214_v42 = vld [vmem:[%s2321_s27 + $0x290] sm:$0xff] }
  0x2b   : > { %211 = vst [vmem:[%s2326_s28 + $0x140] sm:$0xff] %v210_v40  ;;  %213 = vst [vmem:[%s2326_s28 + $0x148] sm:$0xff] %v212_v41  ;;  %v216_v43 = vld [vmem:[%s2321_s27 + $0x298] sm:$0xff]  ;;  %v218_v44 = vld [vmem:[%s2321_s27 + $0x2c0] sm:$0xff] }
  0x2c   : > { %215 = vst [vmem:[%s2326_s28 + $0x150] sm:$0xff] %v214_v42  ;;  %217 = vst [vmem:[%s2326_s28 + $0x158] sm:$0xff] %v216_v43  ;;  %v220_v45 = vld [vmem:[%s2321_s27 + $0x2c8] sm:$0xff]  ;;  %v222_v46 = vld [vmem:[%s2321_s27 + $0x2d0] sm:$0xff] }
  0x2d   : > { %219 = vst [vmem:[%s2326_s28 + $0x160] sm:$0xff] %v218_v44  ;;  %v224_v47 = vld [vmem:[%s2321_s27 + $0x2d8] sm:$0xff]  ;;  %221 = vst [vmem:[%s2326_s28 + $0x168] sm:$0xff] %v220_v45  ;;  %v226_v48 = vld [vmem:[%s2321_s27 + $0x300] sm:$0xff] }
  0x2e   : > { %223 = vst [vmem:[%s2326_s28 + $0x170] sm:$0xff] %v222_v46  ;;  %225 = vst [vmem:[%s2326_s28 + $0x178] sm:$0xff] %v224_v47  ;;  %v228_v49 = vld [vmem:[%s2321_s27 + $0x308] sm:$0xff]  ;;  %v230_v50 = vld [vmem:[%s2321_s27 + $0x310] sm:$0xff] }
  0x2f   : > { %227 = vst [vmem:[%s2326_s28 + $0x180] sm:$0xff] %v226_v48  ;;  %229 = vst [vmem:[%s2326_s28 + $0x188] sm:$0xff] %v228_v49  ;;  %v232_v51 = vld [vmem:[%s2321_s27 + $0x318] sm:$0xff]  ;;  %v234_v52 = vld [vmem:[%s2321_s27 + $0x340] sm:$0xff] }
  0x30   : > { %231 = vst [vmem:[%s2326_s28 + $0x190] sm:$0xff] %v230_v50  ;;  %v236_v53 = vld [vmem:[%s2321_s27 + $0x348] sm:$0xff]  ;;  %233 = vst [vmem:[%s2326_s28 + $0x198] sm:$0xff] %v232_v51  ;;  %v238_v54 = vld [vmem:[%s2321_s27 + $0x350] sm:$0xff] }
  0x31   : > { %235 = vst [vmem:[%s2326_s28 + $0x1a0] sm:$0xff] %v234_v52  ;;  %237 = vst [vmem:[%s2326_s28 + $0x1a8] sm:$0xff] %v236_v53  ;;  %v240_v55 = vld [vmem:[%s2321_s27 + $0x358] sm:$0xff]  ;;  %v242_v56 = vld [vmem:[%s2321_s27 + $0x380] sm:$0xff] }
  0x32   : > { %239 = vst [vmem:[%s2326_s28 + $0x1b0] sm:$0xff] %v238_v54  ;;  %241 = vst [vmem:[%s2326_s28 + $0x1b8] sm:$0xff] %v240_v55  ;;  %v244_v57 = vld [vmem:[%s2321_s27 + $0x388] sm:$0xff]  ;;  %v246_v58 = vld [vmem:[%s2321_s27 + $0x390] sm:$0xff] }
  0x33   : > { %243 = vst [vmem:[%s2326_s28 + $0x1c0] sm:$0xff] %v242_v56  ;;  %v248_v59 = vld [vmem:[%s2321_s27 + $0x398] sm:$0xff]  ;;  %245 = vst [vmem:[%s2326_s28 + $0x1c8] sm:$0xff] %v244_v57  ;;  %v250_v60 = vld [vmem:[%s2321_s27 + $0x3c0] sm:$0xff] }
  0x34   : > { %247 = vst [vmem:[%s2326_s28 + $0x1d0] sm:$0xff] %v246_v58  ;;  %249 = vst [vmem:[%s2326_s28 + $0x1d8] sm:$0xff] %v248_v59  ;;  %v252_v61 = vld [vmem:[%s2321_s27 + $0x3c8] sm:$0xff]  ;;  %v254_v62 = vld [vmem:[%s2321_s27 + $0x3d0] sm:$0xff] }
  0x35   : > { %251 = vst [vmem:[%s2326_s28 + $0x1e0] sm:$0xff] %v250_v60  ;;  %253 = vst [vmem:[%s2326_s28 + $0x1e8] sm:$0xff] %v252_v61  ;;  %v256_v63 = vld [vmem:[%s2321_s27 + $0x3d8] sm:$0xff] }
  0x36   : > { %255 = vst [vmem:[%s2326_s28 + $0x1f0] sm:$0xff] %v254_v62  ;;  %257 = vst [vmem:[%s2326_s28 + $0x1f8] sm:$0xff] %v256_v63 }
  0x37 PF: > { %263 = sbr.rel (!%p2299_p5) target bundleno = 62 (0x3e), region = 43  ;;  %s265_s29 = sand.u32 (%p2299_p5), 1, %s2236_s11  }
  0x38   : > { %s2071_s30 = sshll.u32 (%p2299_p5), %s2240_s12, 4  ;;  %s2073_s3 = smul.u32 (%p2299_p5), 48, %s265_s29 }
  0x39   : > { %s270_s6 = scalar_lea.vmem (%p2299_p5), %s3534_s1, %s2071_s30 }
  0x3a   : > { %v283_v0 = vld [vmem:[%s270_s6] sm:$0xff] (%p2299_p5)  ;;  %v285_v1 = vld [vmem:[%s270_s6 + $0x8] sm:$0xff] (%p2299_p5)  ;;  %s267_s7 = scalar_lea.vmem (%p2299_p5), [#allocation3], %s2073_s3 }
  0x3b   : > { %v287_v2 = vld [vmem:[%s270_s6 + $0x20] sm:$0xff] (%p2299_p5)  ;;  %v289_v3 = vld [vmem:[%s270_s6 + $0x28] sm:$0xff] (%p2299_p5)  ;;  %284 = vst [vmem:[%s267_s7] sm:$0xff] (%p2299_p5), %v283_v0  ;;  %286 = vst [vmem:[%s267_s7 + $0x8] sm:$0xff] (%p2299_p5), %v285_v1 }
  0x3c   : > { %v291_v4 = vld [vmem:[%s270_s6 + $0x40] sm:$0xff] (%p2299_p5)  ;;  %v293_v5 = vld [vmem:[%s270_s6 + $0x48] sm:$0xff] (%p2299_p5)  ;;  %288 = vst [vmem:[%s267_s7 + $0x10] sm:$0xff] (%p2299_p5), %v287_v2  ;;  %290 = vst [vmem:[%s267_s7 + $0x18] sm:$0xff] (%p2299_p5), %v289_v3 }
  0x3d   : > { %292 = vst [vmem:[%s267_s7 + $0x20] sm:$0xff] (%p2299_p5), %v291_v4  ;;  %294 = vst [vmem:[%s267_s7 + $0x28] sm:$0xff] (%p2299_p5), %v293_v5 }
  0x3e PF: > { %p1848_p10 = scmp.ge.s32.totalorder %s2240_s12, 1  ;;  %p299_p11 = scmp.lt.s32.totalorder %s2240_s12, 3 }
  0x40   : > { %p300_p12 = pnand %p1848_p10, %p299_p11 }
  0x42   : > { %303 = sbr.rel (%p300_p12) target bundleno = 291 (0x123), region = 66 }
  0x49   : > { %s2463_s8 = sand.u32 1, %s2232_s10   ;;  %v479_v39 = vlaneseq  ;;  %s2072_s24 = sshll.u32 %s1839_s13, 9 }
  0x4a   : > { %s2074_s14 = smul.u32 48, %s2463_s8  ;;  %s1849_s17 = sshll.u32 %s2463_s8, 9 }
  0x4b   : > { %v2470_v43 = vshrl.u32 %v479_v39, 7  ;;  %s2570_s19 = scalar_lea.vmem [#allocation2], %s1849_s17  ;;  %s2075_s22 = smul.u32 384, %s2463_s8 }
  0x4c   : > { %s2466_s16 = scalar_lea.vmem [#allocation3], %s2074_s14  ;;  %s3485_s28 = scalar_lea.hbm %s3535_s2, %s2072_s24 }
  0x4d   : > { %v341_v6 = vld [vmem:[%s2466_s16] sm:$0xff]  ;;  %v342_v11 = vld [vmem:[%s2466_s16 + $0x8] sm:$0xff]  ;;  %v2475_v45 = vsub.s32 0, %v2470_v43  ;;  %v2478_v46 = vsub.s32 1, %v2470_v43  ;;  %v2481_v47 = vsub.s32 2, %v2470_v43  ;;  %v2484_v48 = vsub.s32 3, %v2470_v43 }
  0x4e   : > { %v1850_v7 = vrot.slane %v341_v6, 9  ;;  %v1852_v8 = vrot.slane %v341_v6, 10  ;;  %v1854_v10 = vrot.slane %v341_v6, 11  ;;  %v1851_v12 = vrot.slane %v342_v11, 9  ;;  %v1910_v51 = vld [vmem:[%s2466_s16 + $0x10] sm:$0xff]  ;;  %v2494_v52 = vld [vmem:[%s2466_s16 + $0x18] sm:$0xff] }
  0x4f   : > { %v1853_v13 = vrot.slane %v342_v11, 10  ;;  %v1855_v16 = vrot.slane %v342_v11, 11  ;;  %3609 = vst [vmem:[#allocation7_spill] sm:$0xff] %v2475_v45  ;;  %3610 = vst [vmem:[#allocation8_spill] sm:$0xff] %v2478_v46  ;;  %v2487_v49 = vsub.s32 4, %v2470_v43  ;;  %v2490_v50 = vsub.s32 5, %v2470_v43 }
  0x50   : > { %v351_v9 = vmax.f32 %v341_v6, %v1850_v7  ;;  %v352_v15 = vmax.f32 %v342_v11, %v1851_v12  ;;  %3611 = vst [vmem:[#allocation9_spill] sm:$0xff] %v2481_v47  ;;  %3612 = vst [vmem:[#allocation10_spill] sm:$0xff] %v2484_v48  ;;  %v2497_v53 = vld [vmem:[%s2466_s16 + $0x20] sm:$0xff]  ;;  %v1912_v55 = vrot.slane %v1910_v51, 9  ;;  %v1914_v56 = vrot.slane %v1910_v51, 10  ;;  %v2509_v0 = vld [vmem:[%s2466_s16 + $0x28] sm:$0xff] }
  0x51   : > { %3613 = vst [vmem:[#allocation11_spill] sm:$0xff] %v2487_v49  ;;  %3614 = vst [vmem:[#allocation12_spill] sm:$0xff] %v2490_v50  ;;  %v1916_v57 = vrot.slane %v1910_v51, 11  ;;  %v1913_v58 = vrot.slane %v2494_v52, 9  ;;  %v1915_v61 = vrot.slane %v2494_v52, 10  ;;  %v1917_v62 = vrot.slane %v2494_v52, 11 }
  0x52   : > { %v359_v14 = vmax.f32 %v351_v9, %v1852_v8  ;;  %v360_v18 = vmax.f32 %v352_v15, %v1853_v13  ;;  %v1990_v63 = vrot.slane %v2497_v53, 9  ;;  %v819_v3 = vmax.f32 %v1910_v51, %v1912_v55  ;;  %s2722_s23 = scalar_lea.vmem [#allocation4], %s2075_s22  ;;  %s1741_s13 = scalar_lea.sflag [#allocation5], %s2463_s8 }
  0x53   : > { %v820_v4 = vmax.f32 %v2494_v52, %v1913_v58  ;;  %v1992_v5 = vrot.slane %v2497_v53, 10  ;;  %v1993_v15 = vrot.slane %v2509_v0, 10  ;;  %s1754_s25 = sshll.u32 %s2722_s23, 4  ;;  %s2242_s30 = smov [#allocation4]   ;;  %s3487_s25 = int_to_ptr.vmem [resolvable:$true] %s1754_s25 }
  0x54   : > { %v367_v17 = vmax.f32 %v359_v14, %v1854_v10  ;;  %v368_v23 = vmax.f32 %v360_v18, %v1855_v16  ;;  %v1285_v9 = vmax.f32 %v2497_v53, %v1990_v63  ;;  %v1994_v10 = vrot.slane %v2497_v53, 11  ;;  %s2178_s29 = scalar_lea.vmem %s3487_s25, 6144  ;;  %s2182_s3 = sshll.u32 %s2242_s30, 4  ;;  %s2183_s3 = int_to_ptr.vmem [resolvable:$false] %s2182_s3 }
  0x55   : > { %v827_v12 = vmax.f32 %v819_v3, %v1914_v56  ;;  %v828_v13 = vmax.f32 %v820_v4, %v1915_v61  ;;  %v1991_v14 = vrot.slane %v2509_v0, 9  ;;  %p2179_p13 = scmp.ne.s32.totalorder %s3487_s25, %s2178_s29  ;;  %s2184_s4 = scalar_lea.vmem %s2183_s3, 12288 }
  0x56   : > { %v369_v19 = vsub.f32 %v341_v6, %v367_v17  ;;  %v377_v20 = vrot.slane %v367_v17, 7  ;;  %v387_v21 = vrot.slane %v367_v17, 6  ;;  %v397_v22 = vrot.slane %v367_v17, 5  ;;  %p2185_p2 = scmp.lt.s32.totalorder %s3487_s25, %s2183_s3  ;;  %p2186_p3 = scmp.lt.s32.totalorder %s2184_s4, %s2178_s29 }
  0x57   : > { %v370_v28 = vsub.f32 %v342_v11, %v368_v23  ;;  %v378_v29 = vrot.slane %v368_v23, 7  ;;  %v388_v30 = vrot.slane %v368_v23, 6  ;;  %v398_v31 = vrot.slane %v368_v23, 5  ;;  %p2180_p0 = pnand %p2179_p13, %p2303_p6 }
  0x58   : > { %v371_v24 = vmul.f32 1.442695, %v369_v19  ;;  %v381_v25 = vsub.f32 %v341_v6, %v377_v20  ;;  %v391_v26 = vsub.f32 %v341_v6, %v387_v21  ;;  %v401_v27 = vsub.f32 %v341_v6, %v397_v22  ;;  %p2187_p4 = por %p2186_p3, %p2185_p2 }
  0x59   : > { %v373_v35 = vmul.f32 1.442695, %v370_v28  ;;  %v382_v36 = vsub.f32 %v342_v11, %v378_v29  ;;  %v392_v37 = vsub.f32 %v342_v11, %v388_v30  ;;  %v402_v38 = vsub.f32 %v342_v11, %v398_v31  ;;  %p2181_p1 = pneg %p2180_p0 }
  0x5a   : > { %2118 = vpow2.f32 %v371_v24  ;;  %v383_v32 = vmul.f32 1.442695, %v381_v25  ;;  %v393_v33 = vmul.f32 1.442695, %v391_v26  ;;  %v403_v34 = vmul.f32 1.442695, %v401_v27 }
  0x5b   : > { %v385_v40 = vmul.f32 1.442695, %v382_v36  ;;  %v395_v41 = vmul.f32 1.442695, %v392_v37  ;;  %v405_v42 = vmul.f32 1.442695, %v402_v38  ;;  %v1293_v19 = vmax.f32 %v1285_v9, %v1992_v5  ;;  %p2188_p5 = pnand %p2187_p4, %p2181_p1 }
  0x5c   : > { %2120 = vpow2.f32 %v383_v32  ;;  %v1995_v20 = vrot.slane %v2509_v0, 11  ;;  %v835_v23 = vmax.f32 %v827_v12, %v1916_v57  ;;  %v836_v24 = vmax.f32 %v828_v13, %v1917_v62 }
  0x5d   : > { %2122 = vpow2.f32 %v393_v33  ;;  %v1286_v25 = vmax.f32 %v2509_v0, %v1991_v14  ;;  %v1301_v29 = vmax.f32 %v1293_v19, %v1994_v10 }
  0x5e   : > { %2124 = vpow2.f32 %v403_v34  ;;  %v837_v30 = vsub.f32 %v1910_v51, %v835_v23  ;;  %v845_v31 = vrot.slane %v835_v23, 7  ;;  %v855_v32 = vrot.slane %v835_v23, 6 }
  0x5f   : > { %2126 = vpow2.f32 %v373_v35  ;;  %v865_v33 = vrot.slane %v835_v23, 5  ;;  %v838_v35 = vsub.f32 %v2494_v52, %v836_v24  ;;  %v846_v36 = vrot.slane %v836_v24, 7 }
  0x60   : > { %2128 = vpow2.f32 %v385_v40  ;;  %v839_v37 = vmul.f32 1.442695, %v837_v30  ;;  %v849_v38 = vsub.f32 %v1910_v51, %v845_v31  ;;  %v859_v39 = vsub.f32 %v1910_v51, %v855_v32 }
  0x61   : > { %2130 = vpow2.f32 %v395_v41  ;;  %v869_v40 = vsub.f32 %v1910_v51, %v865_v33  ;;  %v850_v55 = vsub.f32 %v2494_v52, %v846_v36  ;;  %v856_v56 = vrot.slane %v836_v24, 6  ;;  %v2573_v33 = vld [vmem:[%s2570_s19] sm:$0xff] }
  0x62   : > { %2132 = vpow2.f32 %v405_v42  ;;  %v841_v42 = vmul.f32 1.442695, %v838_v35  ;;  %v851_v57 = vmul.f32 1.442695, %v849_v38  ;;  %v861_v58 = vmul.f32 1.442695, %v859_v39 }
  0x63   : > { %v853_v61 = vmul.f32 1.442695, %v850_v55  ;;  %v860_v62 = vsub.f32 %v2494_v52, %v856_v56  ;;  %v866_v63 = vrot.slane %v836_v24, 5  ;;  %v1311_v3 = vrot.slane %v1301_v29, 7  ;;  %3617 = vst [vmem:[#allocation15_spill] sm:$0xff] %v2573_v33  ;;  %v2590_v39 = vld [vmem:[%s2570_s19 + $0x8] sm:$0xff] }
  0x64   : > { %v2472_v44 = vpop.eup %2118  ;;  %v1321_v51 = vrot.slane %v1301_v29, 6  ;;  %v1294_v14 = vmax.f32 %v1286_v25, %v1993_v15  ;;  %3618 = vst [vmem:[#allocation16_spill] sm:$0xff] %v2590_v39  ;;  %v2601_v55 = vld [vmem:[%s2570_s19 + $0x180] sm:$0xff] }
  0x65   : > { %v863_v4 = vmul.f32 1.442695, %v860_v62  ;;  %v870_v5 = vsub.f32 %v2494_v52, %v866_v63  ;;  %v1315_v9 = vsub.f32 %v2497_v53, %v1311_v3  ;;  %3621 = vst [vmem:[#allocation19_spill] sm:$0xff] %v2601_v55 }
  0x66   : > { %v2499_v54 = vpop.eup %2120  ;;  %v1325_v10 = vsub.f32 %v2497_v53, %v1321_v51  ;;  %v2557_v24 = vmax.f32 %v1294_v14, %v1995_v20  ;;  %v2623_v51 = vld [vmem:[%s2570_s19 + $0x88] sm:$0xff] }
  0x67   : > { %v2502_v59 = vpop.eup %2122  ;;  %v1856_v60 = vrot.slane %v2499_v54, 9  ;;  %v873_v12 = vmul.f32 1.442695, %v870_v5  ;;  %3622 = vst [vmem:[#allocation20_spill] sm:$0xff] %v2623_v51  ;;  %v2629_v5 = vld [vmem:[%s2570_s19 + $0x188] sm:$0xff] }
  0x68   : > { %v2511_v1 = vpop.eup %2124  ;;  %v1858_v2 = vrot.slane %v2502_v59, 10  ;;  %v1312_v25 = vrot.slane %v2557_v24, 7  ;;  %3624 = vst [vmem:[#allocation22_spill] sm:$0xff] %v2629_v5 }
  0x69   : > { %v2516_v6 = vpop.eup %2126  ;;  %v415_v7 = vadd.f32 %v2472_v44, %v1856_v60  ;;  %v1860_v8 = vrot.slane %v2511_v1, 11  ;;  %v871_v60 = vmul.f32 1.442695, %v869_v40 }
  0x6a   : > { %v2522_v11 = vpop.eup %2128 }
  0x6b   : > { %v2526_v16 = vpop.eup %2130  ;;  %v425_v17 = vadd.f32 %v1858_v2, %v415_v7  ;;  %v1857_v18 = vrot.slane %v2522_v11, 9  ;;  %v1303_v2 = vsub.f32 %v2497_v53, %v1301_v29  ;;  %v1331_v7 = vrot.slane %v1301_v29, 5 }
  0x6c   : > { %v2530_v21 = vpop.eup %2132  ;;  %v1859_v22 = vrot.slane %v2526_v16, 10 }
  0x6d   : > { %v435_v26 = vadd.f32 %v1860_v8, %v425_v17  ;;  %v416_v27 = vadd.f32 %v2516_v6, %v1857_v18  ;;  %v1861_v28 = vrot.slane %v2530_v21, 11  ;;  %v2542_v8 = vsub.s32 6, %v2470_v43 }
  0x6e   : > { %v1335_v13 = vsub.f32 %v2497_v53, %v1331_v7  ;;  %v2549_v17 = vsub.s32 7, %v2470_v43  ;;  %v1305_v52 = vmul.f32 1.442695, %v1303_v2  ;;  %v2551_v18 = vmul.f32 1.442695, %v1315_v9 }
  0x6f   : > { %2134 = vrcp.f32 %v435_v26  ;;  %v426_v34 = vadd.f32 %v1859_v22, %v416_v27  ;;  %3615 = vst [vmem:[#allocation13_spill] sm:$0xff] %v2542_v8  ;;  %v2553_v22 = vmul.f32 1.442695, %v1325_v10  ;;  %v1304_v43 = vsub.f32 %v2509_v0, %v2557_v24 }
  0x70   : > { %2136 = vpow2.f32 %v839_v37  ;;  %3616 = vst [vmem:[#allocation14_spill] sm:$0xff] %v2549_v17  ;;  %v2555_v23 = vmul.f32 1.442695, %v1335_v13 }
  0x71   : > { %v436_v41 = vadd.f32 %v1861_v28, %v426_v34 }
  0x73   : > { %2138 = vrcp.f32 %v436_v41  ;;  %v2595_v41 = vld [vmem:[%s2570_s19 + $0x80] sm:$0xff] }
  0x74   : > { %2140 = vpow2.f32 %v851_v57  ;;  %3619 = vst [vmem:[#allocation17_spill] sm:$0xff] %v2595_v41 }
  0x75   : > { %2142 = vpow2.f32 %v861_v58 }
  0x76   : > { %2144 = vpow2.f32 %v871_v60 }
  0x77   : > { %2146 = vpow2.f32 %v841_v42  ;;  %v2598_v42 = vld [vmem:[%s2570_s19 + $0x100] sm:$0xff] }
  0x78   : > { %2148 = vpow2.f32 %v853_v61  ;;  %3620 = vst [vmem:[#allocation18_spill] sm:$0xff] %v2598_v42 }
  0x79   : > { %v2135_v19 = vpop.eup %2134  ;;  %2150 = vpow2.f32 %v863_v4  ;;  %v2626_v4 = vld [vmem:[%s2570_s19 + $0x108] sm:$0xff] }
  0x7a   : > { %v439_v26 = vmul.f32 %v2135_v19, %v2472_v44  ;;  %v443_v27 = vrot.slane %v2135_v19, 7  ;;  %v449_v53 = vrot.slane %v2135_v19, 6  ;;  %v455_v15 = vrot.slane %v2135_v19, 5  ;;  %v2564_v29 = vpop.eup %2136  ;;  %3623 = vst [vmem:[#allocation21_spill] sm:$0xff] %v2626_v4 }
  0x7b   : > { %2152 = vpow2.f32 %v873_v12 }
  0x7c   : > { %v447_v30 = vmul.f32 %v2499_v54, %v443_v27  ;;  %v453_v20 = vmul.f32 %v2502_v59, %v449_v53  ;;  %v459_v31 = vmul.f32 %v2511_v1, %v455_v15  ;;  %v482_v44 = vrot.slane %v439_v26, %v2475_v45  ;;  %v2654_v53 = vld [vmem:[%s2570_s19 + $0x20] sm:$0xff] }
  0x7d   : > { %v2139_v32 = vpop.eup %2138  ;;  %v486_v34 = vrot.slane %v439_v26, %v2487_v49  ;;  %2154 = vpow2.f32 %v1305_v52  ;;  %v2576_v54 = vmul.f32 1.442695, %v1304_v43  ;;  %v2579_v59 = vsub.f32 %v2509_v0, %v1312_v25  ;;  %3625 = vst [vmem:[#allocation23_spill] sm:$0xff] %v2654_v53 }
  0x7e   : > { %v2581_v1 = vpop.eup %2140  ;;  %v2584_v35 = vrot.slane %v482_v44, %v2475_v45  ;;  %v553_v36 = vrot.slane %v447_v30, %v2478_v46  ;;  %v640_v37 = vrot.slane %v453_v20, %v2481_v47  ;;  %v727_v38 = vrot.slane %v459_v31, %v2484_v48 }
  0x7f   : > { %v2592_v40 = vpop.eup %2142  ;;  %v2604_v56 = vrot.slane %v486_v34, %v2475_v45  ;;  %v557_v57 = vrot.slane %v447_v30, %v2490_v50  ;;  %v644_v58 = vrot.slane %v453_v20, %v2542_v8  ;;  %v731_v60 = vrot.slane %v459_v31, %v2549_v17 }
  0x80   : > { %v2609_v61 = vpop.eup %2144  ;;  %v515_v62 = vmul.f32 %v2584_v35, %v2573_v33  ;;  %v2614_v63 = vrot.slane %v553_v36, %v2478_v46  ;;  %v2617_v2 = vrot.slane %v640_v37, %v2481_v47  ;;  %v2620_v3 = vrot.slane %v727_v38, %v2484_v48  ;;  %v2779_v33 = vld [vmem:[%s2570_s19 + $0xb0] sm:$0xff] }
  0x81   : > { %v2631_v7 = vpop.eup %2146  ;;  %v516_v9 = vmul.f32 %v2604_v56, %v2590_v39  ;;  %v2636_v10 = vrot.slane %v557_v57, %v2478_v46  ;;  %v2639_v12 = vrot.slane %v644_v58, %v2481_v47  ;;  %v2642_v13 = vrot.slane %v731_v60, %v2484_v48  ;;  %v2670_v57 = vld [vmem:[%s2570_s19 + $0x10] sm:$0xff]  ;;  %3642 = vst [vmem:[#allocation40_spill] sm:$0xff] %v2779_v33 }
  0x82   : > { %v2644_v14 = vpop.eup %2148  ;;  %v586_v52 = vmul.f32 %v2595_v41, %v2614_v63  ;;  %v673_v19 = vmul.f32 %v2598_v42, %v2617_v2  ;;  %v760_v26 = vmul.f32 %v2601_v55, %v2620_v3  ;;  %v440_v27 = vmul.f32 %v2139_v32, %v2516_v6  ;;  %3626 = vst [vmem:[#allocation24_spill] sm:$0xff] %v2670_v57  ;;  %v2768_v55 = vld [vmem:[%s2570_s19 + $0x128] sm:$0xff] }
  0x83   : > { %v2656_v15 = vpop.eup %2150  ;;  %v587_v43 = vmul.f32 %v2623_v51, %v2636_v10  ;;  %v674_v25 = vmul.f32 %v2626_v4, %v2639_v12  ;;  %v761_v30 = vmul.f32 %v2629_v5, %v2642_v13  ;;  %v444_v20 = vrot.slane %v2139_v32, 7  ;;  %v2737_v5 = vld [vmem:[%s2570_s19 + $0x1a0] sm:$0xff]  ;;  %v2755_v51 = vld [vmem:[%s2570_s19 + $0xa8] sm:$0xff]  ;;  %3639 = vst [vmem:[#allocation37_spill] sm:$0xff] %v2768_v55 }
  0x84   : > { %v602_v31 = vadd.f32 %v586_v52, %v515_v62  ;;  %v450_v44 = vrot.slane %v2139_v32, 6  ;;  %v456_v6 = vrot.slane %v2139_v32, 5  ;;  %v490_v34 = vrot.slane %v440_v27, %v2475_v45  ;;  %3635 = vst [vmem:[#allocation33_spill] sm:$0xff] %v2737_v5  ;;  %3638 = vst [vmem:[#allocation36_spill] sm:$0xff] %v2755_v51 }
  0x85   : > { %v2666_v36 = vpop.eup %2152  ;;  %v603_v37 = vadd.f32 %v587_v43, %v516_v9  ;;  %v448_v38 = vmul.f32 %v2522_v11, %v444_v20  ;;  %v494_v58 = vrot.slane %v440_v27, %v2487_v49  ;;  %v519_v60 = vmul.f32 %v2584_v35, %v2654_v53  ;;  %v2681_v9 = vld [vmem:[%s2570_s19 + $0x18] sm:$0xff]  ;;  %v2686_v43 = vld [vmem:[%s2570_s19 + $0x90] sm:$0xff] }
  0x86   : > { %v689_v28 = vadd.f32 %v673_v19, %v602_v31  ;;  %v454_v62 = vmul.f32 %v2526_v16, %v450_v44  ;;  %v460_v32 = vmul.f32 %v2530_v21, %v456_v6  ;;  %v2678_v52 = vrot.slane %v490_v34, %v2475_v45  ;;  %3627 = vst [vmem:[#allocation25_spill] sm:$0xff] %v2681_v9  ;;  %v2701_v34 = vld [vmem:[%s2570_s19 + $0xa0] sm:$0xff] }
  0x87   : > { %v2683_v11 = vpop.eup %2154  ;;  %v690_v27 = vadd.f32 %v674_v25, %v603_v37  ;;  %3628 = vst [vmem:[#allocation26_spill] sm:$0xff] %v2686_v43  ;;  %v561_v19 = vrot.slane %v448_v38, %v2478_v46  ;;  %v2690_v16 = vrot.slane %v494_v58, %v2475_v45  ;;  %v565_v21 = vrot.slane %v448_v38, %v2490_v50  ;;  %v2698_v25 = vld [vmem:[%s2570_s19 + $0x98] sm:$0xff]  ;;  %v2704_v37 = vld [vmem:[%s2570_s19 + $0x120] sm:$0xff] }
  0x88   : > { %v776_v20 = vadd.f32 %v760_v26, %v689_v28  ;;  %v517_v31 = vmul.f32 %v2678_v52, %v2670_v57  ;;  %v648_v44 = vrot.slane %v454_v62, %v2481_v47  ;;  %v735_v6 = vrot.slane %v460_v32, %v2484_v48  ;;  %3629 = vst [vmem:[#allocation27_spill] sm:$0xff] %v2698_v25  ;;  %v2710_v28 = vld [vmem:[%s2570_s19 + $0x110] sm:$0xff] }
  0x89   : > { %3630 = vst [vmem:[#allocation28_spill] sm:$0xff] %v2701_v34  ;;  %3631 = vst [vmem:[#allocation29_spill] sm:$0xff] %v2704_v37  ;;  %v777_v58 = vadd.f32 %v761_v30, %v690_v27  ;;  %v2707_v53 = vrot.slane %v561_v19, %v2478_v46  ;;  %v2713_v26 = vld [vmem:[%s2570_s19 + $0x190] sm:$0xff]  ;;  %v518_v38 = vmul.f32 %v2690_v16, %v2681_v9  ;;  %v2732_v19 = vld [vmem:[%s2570_s19 + $0x118] sm:$0xff]  ;;  %2156 = vpow2.f32 %v2551_v18 }
  0x8a   : > { %3632 = vst [vmem:[#allocation30_spill] sm:$0xff] %v2710_v28  ;;  %3633 = vst [vmem:[#allocation31_spill] sm:$0xff] %v2713_v26  ;;  %v2718_v57 = vrot.slane %v565_v21, %v2478_v46  ;;  %v2726_v30 = vrot.slane %v648_v44, %v2481_v47  ;;  %v2729_v27 = vrot.slane %v735_v6, %v2484_v48  ;;  %v2745_v6 = vld [vmem:[%s2570_s19 + $0x198] sm:$0xff]  ;;  %2158 = vpow2.f32 %v2553_v22 }
  0x8b   : > { %792 = vst [vmem:[%s2722_s23] sm:$0xff] %v776_v20  ;;  %3634 = vst [vmem:[#allocation32_spill] sm:$0xff] %v2732_v19  ;;  %v652_v9 = vrot.slane %v454_v62, %v2542_v8  ;;  %v739_v21 = vrot.slane %v460_v32, %v2549_v17  ;;  %v588_v20 = vmul.f32 %v2686_v43, %v2707_v53  ;;  %v2752_v32 = vld [vmem:[%s2570_s19 + $0x28] sm:$0xff]  ;;  %2160 = vpow2.f32 %v2555_v23 }
  0x8c   : > { %793 = vst [vmem:[%s2722_s23 + $0x8] sm:$0xff] %v777_v58  ;;  %v589_v44 = vmul.f32 %v2698_v25, %v2718_v57  ;;  %3636 = vst [vmem:[#allocation34_spill] sm:$0xff] %v2745_v6  ;;  %v590_v4 = vmul.f32 %v2701_v34, %v2614_v63  ;;  %v677_v62 = vmul.f32 %v2704_v37, %v2617_v2  ;;  %v2771_v37 = vld [vmem:[%s2570_s19 + $0x1a8] sm:$0xff]  ;;  %2162 = vpow2.f32 %v2576_v54 }
  0x8d   : > { %3637 = vst [vmem:[#allocation35_spill] sm:$0xff] %v2752_v32  ;;  %v675_v58 = vmul.f32 %v2710_v28, %v2726_v30  ;;  %v762_v25 = vmul.f32 %v2713_v26, %v2729_v27  ;;  %v2762_v43 = vrot.slane %v652_v9, %v2481_v47  ;;  %v2765_v34 = vrot.slane %v739_v21, %v2484_v48  ;;  %v2776_v26 = vld [vmem:[%s2570_s19 + $0x30] sm:$0xff] }
  0x8e   : > { %3640 = vst [vmem:[#allocation38_spill] sm:$0xff] %v2771_v37  ;;  %v604_v42 = vadd.f32 %v588_v20, %v517_v31  ;;  %v605_v41 = vadd.f32 %v589_v44, %v518_v38  ;;  %v606_v28 = vadd.f32 %v590_v4, %v519_v60  ;;  %v764_v39 = vmul.f32 %v2737_v5, %v2620_v3  ;;  %v2790_v60 = vld [vmem:[%s2570_s19 + $0x130] sm:$0xff]  ;;  %v2800_v5 = vld [vmem:[%s2570_s19 + $0x38] sm:$0xff] }
  0x8f   : > { %3641 = vst [vmem:[#allocation39_spill] sm:$0xff] %v2776_v26  ;;  %v676_v9 = vmul.f32 %v2732_v19, %v2762_v43  ;;  %v763_v21 = vmul.f32 %v2745_v6, %v2765_v34  ;;  %v520_v31 = vmul.f32 %v2604_v56, %v2752_v32  ;;  %v591_v4 = vmul.f32 %v2755_v51, %v2636_v10  ;;  %v2793_v38 = vld [vmem:[%s2570_s19 + $0x1b0] sm:$0xff]  ;;  %v2803_v32 = vld [vmem:[%s2570_s19 + $0xb8] sm:$0xff] }
  0x90   : > { %3643 = vst [vmem:[#allocation41_spill] sm:$0xff] %v2790_v60  ;;  %3644 = vst [vmem:[#allocation42_spill] sm:$0xff] %v2793_v38  ;;  %v691_v20 = vadd.f32 %v675_v58, %v604_v42  ;;  %v693_v44 = vadd.f32 %v677_v62, %v606_v28  ;;  %v678_v19 = vmul.f32 %v2768_v55, %v2639_v12  ;;  %v2810_v28 = vld [vmem:[%s2570_s19 + $0x138] sm:$0xff]  ;;  %v2816_v58 = vld [vmem:[%s2570_s19 + $0x40] sm:$0xff]  ;;  %v1332_v22 = vrot.slane %v2557_v24, 5 }
  0x91   : > { %v765_v6 = vmul.f32 %v2771_v37, %v2642_v13  ;;  %3645 = vst [vmem:[#allocation43_spill] sm:$0xff] %v2800_v5  ;;  %3646 = vst [vmem:[#allocation44_spill] sm:$0xff] %v2803_v32  ;;  %v692_v17 = vadd.f32 %v676_v9, %v605_v41  ;;  %v607_v51 = vadd.f32 %v591_v4, %v520_v31  ;;  %v2813_v62 = vld [vmem:[%s2570_s19 + $0x1b8] sm:$0xff]  ;;  %v2823_v4 = vld [vmem:[%s2570_s19 + $0xc0] sm:$0xff] }
  0x92   : > { %v521_v8 = vmul.f32 %v2678_v52, %v2776_v26  ;;  %v592_v42 = vmul.f32 %v2779_v33, %v2707_v53  ;;  %3647 = vst [vmem:[#allocation45_spill] sm:$0xff] %v2810_v28  ;;  %3648 = vst [vmem:[#allocation46_spill] sm:$0xff] %v2813_v62  ;;  %v778_v37 = vadd.f32 %v762_v25, %v691_v20  ;;  %v2826_v33 = vld [vmem:[%s2570_s19 + $0x140] sm:$0xff]  ;;  %v2834_v20 = vld [vmem:[%s2570_s19 + $0x48] sm:$0xff] }
  0x93   : > { %3649 = vst [vmem:[#allocation47_spill] sm:$0xff] %v2816_v58  ;;  %v780_v41 = vadd.f32 %v764_v39, %v693_v44  ;;  %v679_v9 = vmul.f32 %v2790_v60, %v2726_v30  ;;  %v766_v31 = vmul.f32 %v2793_v38, %v2729_v27  ;;  %3650 = vst [vmem:[#allocation48_spill] sm:$0xff] %v2823_v4  ;;  %v2831_v39 = vld [vmem:[%s2570_s19 + $0x1c0] sm:$0xff]  ;;  %v2837_v44 = vld [vmem:[%s2570_s19 + $0xc8] sm:$0xff]  ;;  %v3019_v23 = vpop.eup %2156 }
  0x94   : > { %3651 = vst [vmem:[#allocation49_spill] sm:$0xff] %v2826_v33  ;;  %v779_v26 = vadd.f32 %v763_v21, %v692_v17  ;;  %v694_v55 = vadd.f32 %v678_v19, %v607_v51  ;;  %v608_v50 = vadd.f32 %v592_v42, %v521_v8  ;;  %v522_v25 = vmul.f32 %v2690_v16, %v2800_v5  ;;  %v2850_v19 = vld [vmem:[%s2570_s19 + $0x148] sm:$0xff] }
  0x95   : > { %3652 = vst [vmem:[#allocation50_spill] sm:$0xff] %v2831_v39  ;;  %3653 = vst [vmem:[#allocation51_spill] sm:$0xff] %v2834_v20  ;;  %v593_v38 = vmul.f32 %v2803_v32, %v2718_v57  ;;  %v680_v17 = vmul.f32 %v2810_v28, %v2762_v43  ;;  %v767_v8 = vmul.f32 %v2813_v62, %v2765_v34  ;;  %v2861_v28 = vld [vmem:[%s2570_s19 + $0x50] sm:$0xff] }
  0x96   : > { %3654 = vst [vmem:[#allocation52_spill] sm:$0xff] %v2837_v44  ;;  %794 = vst [vmem:[%s2722_s23 + $0x10] sm:$0xff] %v778_v37  ;;  %v523_v51 = vmul.f32 %v2584_v35, %v2816_v58  ;;  %v2853_v37 = vld [vmem:[%s2570_s19 + $0x1c8] sm:$0xff]  ;;  %v781_v21 = vadd.f32 %v765_v6, %v694_v55  ;;  %v695_v42 = vadd.f32 %v679_v9, %v608_v50  ;;  %v2864_v32 = vld [vmem:[%s2570_s19 + $0xd0] sm:$0xff] }
  0x97   : > { %796 = vst [vmem:[%s2722_s23 + $0x20] sm:$0xff] %v780_v41  ;;  %3655 = vst [vmem:[#allocation53_spill] sm:$0xff] %v2850_v19  ;;  %v594_v41 = vmul.f32 %v2823_v4, %v2614_v63  ;;  %v681_v62 = vmul.f32 %v2826_v33, %v2617_v2  ;;  %v609_v58 = vadd.f32 %v593_v38, %v522_v25  ;;  %v2876_v6 = vld [vmem:[%s2570_s19 + $0x1d0] sm:$0xff]  ;;  %v2879_v9 = vld [vmem:[%s2570_s19 + $0x58] sm:$0xff] }
  0x98   : > { %3656 = vst [vmem:[#allocation54_spill] sm:$0xff] %v2853_v37  ;;  %795 = vst [vmem:[%s2722_s23 + $0x18] sm:$0xff] %v779_v26  ;;  %v768_v5 = vmul.f32 %v2831_v39, %v2620_v3  ;;  %v524_v55 = vmul.f32 %v2604_v56, %v2834_v20  ;;  %v595_v50 = vmul.f32 %v2837_v44, %v2636_v10  ;;  %v2873_v26 = vld [vmem:[%s2570_s19 + $0x150] sm:$0xff]  ;;  %v2887_v44 = vld [vmem:[%s2570_s19 + $0xd8] sm:$0xff] }
  0x99   : > { %3657 = vst [vmem:[#allocation55_spill] sm:$0xff] %v2861_v28  ;;  %3658 = vst [vmem:[#allocation56_spill] sm:$0xff] %v2864_v32  ;;  %v782_v38 = vadd.f32 %v766_v31, %v695_v42  ;;  %v610_v25 = vadd.f32 %v594_v41, %v523_v51  ;;  %v682_v39 = vmul.f32 %v2850_v19, %v2639_v12  ;;  %v2894_v51 = vld [vmem:[%s2570_s19 + $0x158] sm:$0xff]  ;;  %v2900_v42 = vld [vmem:[%s2570_s19 + $0x60] sm:$0xff] }
  0x9a   : > { %3659 = vst [vmem:[#allocation57_spill] sm:$0xff] %v2873_v26  ;;  %3660 = vst [vmem:[#allocation58_spill] sm:$0xff] %v2876_v6  ;;  %v769_v20 = vmul.f32 %v2853_v37, %v2642_v13  ;;  %v696_v33 = vadd.f32 %v680_v17, %v609_v58  ;;  %v611_v4 = vadd.f32 %v595_v50, %v524_v55  ;;  %v2910_v50 = vld [vmem:[%s2570_s19 + $0xe0] sm:$0xff] }
  0x9b   : > { %3661 = vst [vmem:[#allocation59_spill] sm:$0xff] %v2879_v9  ;;  %797 = vst [vmem:[%s2722_s23 + $0x28] sm:$0xff] %v781_v21  ;;  %v525_v60 = vmul.f32 %v2678_v52, %v2861_v28  ;;  %v596_v31 = vmul.f32 %v2864_v32, %v2707_v53  ;;  %v2897_v21 = vld [vmem:[%s2570_s19 + $0x1d8] sm:$0xff]  ;;  %v697_v41 = vadd.f32 %v681_v62, %v610_v25  ;;  %v2913_v32 = vld [vmem:[%s2570_s19 + $0x160] sm:$0xff] }
  0x9c   : > { %3662 = vst [vmem:[#allocation60_spill] sm:$0xff] %v2894_v51  ;;  %3663 = vst [vmem:[#allocation61_spill] sm:$0xff] %v2897_v21  ;;  %v683_v58 = vmul.f32 %v2873_v26, %v2726_v30  ;;  %v770_v17 = vmul.f32 %v2876_v6, %v2729_v27  ;;  %v526_v55 = vmul.f32 %v2690_v16, %v2879_v9  ;;  %v2918_v25 = vld [vmem:[%s2570_s19 + $0x1e0] sm:$0xff]  ;;  %v2921_v6 = vld [vmem:[%s2570_s19 + $0x68] sm:$0xff] }
  0x9d   : > { %798 = vst [vmem:[%s2722_s23 + $0x30] sm:$0xff] %v782_v38  ;;  %v783_v28 = vadd.f32 %v767_v8, %v696_v33  ;;  %v698_v37 = vadd.f32 %v682_v39, %v611_v4  ;;  %v612_v38 = vadd.f32 %v596_v31, %v525_v60  ;;  %v597_v62 = vmul.f32 %v2887_v44, %v2718_v57  ;;  %v2924_v26 = vld [vmem:[%s2570_s19 + $0xe8] sm:$0xff] }
  0x9e   : > { %3664 = vst [vmem:[#allocation62_spill] sm:$0xff] %v2924_v26  ;;  %v784_v9 = vadd.f32 %v768_v5, %v697_v41  ;;  %v684_v19 = vmul.f32 %v2894_v51, %v2762_v43  ;;  %v771_v33 = vmul.f32 %v2897_v21, %v2765_v34  ;;  %v527_v60 = vmul.f32 %v2584_v35, %v2900_v42  ;;  %v2933_v4 = vld [vmem:[%s2570_s19 + $0x168] sm:$0xff]  ;;  %v2942_v21 = vld [vmem:[%s2570_s19 + $0x70] sm:$0xff] }
  0x9f   : > { %799 = vst [vmem:[%s2722_s23 + $0x38] sm:$0xff] %v783_v28  ;;  %v785_v39 = vadd.f32 %v769_v20, %v698_v37  ;;  %v699_v8 = vadd.f32 %v683_v58, %v612_v38  ;;  %v613_v31 = vadd.f32 %v597_v62, %v526_v55  ;;  %v598_v5 = vmul.f32 %v2910_v50, %v2614_v63  ;;  %v2939_v41 = vld [vmem:[%s2570_s19 + $0x1e8] sm:$0xff]  ;;  %v2945_v51 = vld [vmem:[%s2570_s19 + $0xf0] sm:$0xff]  ;;  %v2966_v38 = vld [vmem:[%s2570_s19 + $0x78] sm:$0xff] }
  0xa0   : > { %800 = vst [vmem:[%s2722_s23 + $0x40] sm:$0xff] %v784_v9  ;;  %v685_v35 = vmul.f32 %v2913_v32, %v2617_v2  ;;  %v772_v28 = vmul.f32 %v2918_v25, %v2620_v3  ;;  %v528_v20 = vmul.f32 %v2604_v56, %v2921_v6  ;;  %v599_v63 = vmul.f32 %v2924_v26, %v2636_v10  ;;  %v2957_v37 = vld [vmem:[%s2570_s19 + $0x170] sm:$0xff]  ;;  %v2969_v62 = vld [vmem:[%s2570_s19 + $0xf8] sm:$0xff] }
  0xa1   : > { %v2960_v58 = vld [vmem:[%s2570_s19 + $0x1f0] sm:$0xff]  ;;  %801 = vst [vmem:[%s2722_s23 + $0x48] sm:$0xff] %v785_v39  ;;  %v786_v9 = vadd.f32 %v770_v17, %v699_v8  ;;  %v700_v55 = vadd.f32 %v684_v19, %v613_v31  ;;  %v614_v2 = vadd.f32 %v598_v5, %v527_v60  ;;  %v686_v3 = vmul.f32 %v2933_v4, %v2639_v12  ;;  %v2978_v19 = vld [vmem:[%s2570_s19 + $0x178] sm:$0xff] }
  0xa2   : > { %v615_v56 = vadd.f32 %v599_v63, %v528_v20  ;;  %v773_v10 = vmul.f32 %v2939_v41, %v2642_v13  ;;  %v529_v26 = vmul.f32 %v2678_v52, %v2942_v21  ;;  %v600_v17 = vmul.f32 %v2945_v51, %v2707_v53  ;;  %v2981_v60 = vld [vmem:[%s2570_s19 + $0x1f8] sm:$0xff] }
  0xa3   : > { %802 = vst [vmem:[%s2722_s23 + $0x50] sm:$0xff] %v786_v9  ;;  %v787_v12 = vadd.f32 %v771_v33, %v700_v55  ;;  %v701_v39 = vadd.f32 %v685_v35, %v614_v2  ;;  %v687_v8 = vmul.f32 %v2957_v37, %v2726_v30  ;;  %v774_v13 = vmul.f32 %v2960_v58, %v2729_v27 }
  0xa4   : > { %v702_v31 = vadd.f32 %v686_v3, %v615_v56  ;;  %v616_v5 = vadd.f32 %v600_v17, %v529_v26  ;;  %v530_v52 = vmul.f32 %v2690_v16, %v2966_v38  ;;  %v601_v53 = vmul.f32 %v2969_v62, %v2718_v57 }
  0xa5   : > { %803 = vst [vmem:[%s2722_s23 + $0x58] sm:$0xff] %v787_v12  ;;  %v788_v20 = vadd.f32 %v772_v28, %v701_v39  ;;  %v688_v33 = vmul.f32 %v2978_v19, %v2762_v43  ;;  %v775_v30 = vmul.f32 %v2981_v60, %v2765_v34  ;;  %v1918_v35 = vrot.slane %v2581_v1, 9 }
  0xa6   : > { %v789_v27 = vadd.f32 %v773_v10, %v702_v31  ;;  %v703_v63 = vadd.f32 %v687_v8, %v616_v5  ;;  %v617_v26 = vadd.f32 %v601_v53, %v530_v52  ;;  %v1920_v16 = vrot.slane %v2592_v40, 10  ;;  %v3021_v5 = vpop.eup %2158 }
  0xa7   : > { %804 = vst [vmem:[%s2722_s23 + $0x60] sm:$0xff] %v788_v20  ;;  %v883_v9 = vadd.f32 %v2564_v29, %v1918_v35  ;;  %v1922_v57 = vrot.slane %v2609_v61, 11  ;;  %v1919_v28 = vrot.slane %v2644_v14, 9  ;;  %v1921_v43 = vrot.slane %v2656_v15, 10  ;;  %v3024_v53 = vpop.eup %2160 }
  0xa8   : > { %805 = vst [vmem:[%s2722_s23 + $0x68] sm:$0xff] %v789_v27  ;;  %v790_v34 = vadd.f32 %v774_v13, %v703_v63  ;;  %v704_v55 = vadd.f32 %v688_v33, %v617_v26  ;;  %v1923_v2 = vrot.slane %v2666_v36, 11  ;;  %v1319_v10 = vmul.f32 1.442695, %v2579_v59  ;;  %3666 = vst [vmem:[#allocation63_spill] sm:$0xff] %v3024_v53  ;;  %v3027_v20 = vpop.eup %2162 }
  0xa9   : > { %v893_v3 = vadd.f32 %v1920_v16, %v883_v9  ;;  %v884_v56 = vadd.f32 %v2631_v7, %v1919_v28  ;;  %v3665_v12 = vrot.slane %v2557_v24, 6  ;;  %v1336_v59 = vsub.f32 %v2509_v0, %v1332_v22  ;;  %3667 = vst [vmem:[#allocation64_spill] sm:$0xff] %v3027_v20 }
  0xaa   : > { %806 = vst [vmem:[%s2722_s23 + $0x70] sm:$0xff] %v790_v34  ;;  %v791_v17 = vadd.f32 %v775_v30, %v704_v55  ;;  %2164 = vpow2.f32 %v1319_v10  ;;  %v1996_v52 = vrot.slane %v3019_v23, 9  ;;  %v1998_v54 = vrot.slane %v3021_v5, 10 }
  0xab   : > { %v1326_v39 = vsub.f32 %v2509_v0, %v3665_v12  ;;  %v903_v8 = vadd.f32 %v1922_v57, %v893_v3  ;;  %v894_v13 = vadd.f32 %v1921_v43, %v884_v56  ;;  %v2000_v24 = vrot.slane %v3024_v53, 11 }
  0xac   : > { %807 = vst [vmem:[%s2722_s23 + $0x78] sm:$0xff] %v791_v17  ;;  %v1349_v33 = vadd.f32 %v2683_v11, %v1996_v52  ;;  %v1339_v30 = vmul.f32 1.442695, %v1336_v59  ;;  %v3670_v59 = vld [vmem:[#allocation13_spill] sm:$0xff] }
  0xad   : > { %v1329_v18 = vmul.f32 1.442695, %v1326_v39  ;;  %2166 = vrcp.f32 %v903_v8  ;;  %v904_v31 = vadd.f32 %v1923_v2, %v894_v13 }
  0xae   : > { %v1359_v27 = vadd.f32 %v1998_v54, %v1349_v33  ;;  %v3671_v54 = vld [vmem:[#allocation14_spill] sm:$0xff]  ;;  %v3672_v33 = vld [vmem:[#allocation15_spill] sm:$0xff] }
  0xaf   : > { %2168 = vpow2.f32 %v1329_v18 }
  0xb0   : > { %2170 = vrcp.f32 %v904_v31  ;;  %v3037_v34 = vadd.f32 %v2000_v24, %v1359_v27 }
  0xb1   : > { %2172 = vpow2.f32 %v1339_v30 }
  0xb2   : > { %2174 = vrcp.f32 %v3037_v34 }
  0xb4   : > { %v3031_v35 = vpop.eup %2164 }
  0xb5   : > { %3668 = vst [vmem:[#allocation65_spill] sm:$0xff] %v3031_v35  ;;  %v1997_v63 = vrot.slane %v3031_v35, 9 }
  0xb7   : > { %v2167_v0 = vpop.eup %2166  ;;  %v3040_v55 = vadd.f32 %v3027_v20, %v1997_v63  ;;  %v3673_v63 = vld [vmem:[#allocation16_spill] sm:$0xff] }
  0xb8   : > { %v907_v16 = vmul.f32 %v2167_v0, %v2564_v29  ;;  %v911_v9 = vrot.slane %v2167_v0, 7  ;;  %v917_v57 = vrot.slane %v2167_v0, 6  ;;  %v923_v28 = vrot.slane %v2167_v0, 5 }
  0xb9   : > { %v3034_v26 = vpop.eup %2168 }
  0xba   : > { %v2171_v43 = vpop.eup %2170  ;;  %v915_v3 = vmul.f32 %v2581_v1, %v911_v9  ;;  %v921_v56 = vmul.f32 %v2592_v40, %v917_v57  ;;  %v927_v10 = vmul.f32 %v2609_v61, %v923_v28  ;;  %v950_v29 = vrot.slane %v907_v16, %v2475_v45  ;;  %v3669_v61 = vld [vmem:[#allocation12_spill] sm:$0xff] }
  0xbb   : > { %v954_v17 = vrot.slane %v907_v16, %v2487_v49  ;;  %v908_v12 = vmul.f32 %v2171_v43, %v2631_v7  ;;  %v912_v39 = vrot.slane %v2171_v43, 7  ;;  %v918_v8 = vrot.slane %v2171_v43, 6 }
  0xbc   : > { %v3050_v13 = vrot.slane %v950_v29, %v2475_v45  ;;  %v1020_v18 = vrot.slane %v915_v3, %v2478_v46  ;;  %v1106_v31 = vrot.slane %v921_v56, %v2481_v47  ;;  %v1192_v1 = vrot.slane %v927_v10, %v2484_v48 }
  0xbd   : > { %v3056_v40 = vrot.slane %v954_v17, %v2475_v45  ;;  %v1024_v22 = vrot.slane %v915_v3, %v3669_v61  ;;  %v1110_v52 = vrot.slane %v921_v56, %v3670_v59  ;;  %v1196_v7 = vrot.slane %v927_v10, %v3671_v54  ;;  %v3674_v3 = vld [vmem:[#allocation17_spill] sm:$0xff]  ;;  %v3675_v10 = vld [vmem:[#allocation18_spill] sm:$0xff]  ;;  %v3676_v17 = vld [vmem:[#allocation19_spill] sm:$0xff] }
  0xbe   : > { %v983_v24 = vmul.f32 %v3050_v13, %v3672_v33  ;;  %v3064_v30 = vrot.slane %v1020_v18, %v2478_v46  ;;  %v3067_v0 = vrot.slane %v1106_v31, %v2481_v47  ;;  %v3070_v27 = vrot.slane %v1192_v1, %v2484_v48  ;;  %v3677_v1 = vld [vmem:[#allocation20_spill] sm:$0xff] }
  0xbf   : > { %v984_v16 = vmul.f32 %v3056_v40, %v3673_v63  ;;  %v3075_v9 = vrot.slane %v1024_v22, %v2478_v46  ;;  %v3078_v57 = vrot.slane %v1110_v52, %v2481_v47  ;;  %v3081_v28 = vrot.slane %v1196_v7, %v2484_v48  ;;  %v3678_v52 = vld [vmem:[#allocation21_spill] sm:$0xff]  ;;  %v3679_v7 = vld [vmem:[#allocation22_spill] sm:$0xff] }
  0xc0   : > { %v1053_v56 = vmul.f32 %v3674_v3, %v3064_v30  ;;  %v1139_v29 = vmul.f32 %v3675_v10, %v3067_v0  ;;  %v1225_v18 = vmul.f32 %v3676_v17, %v3070_v27  ;;  %v916_v31 = vmul.f32 %v2644_v14, %v912_v39  ;;  %v3099_v17 = vpop.eup %2172 }
  0xc1   : > { %v1054_v22 = vmul.f32 %v3677_v1, %v3075_v9  ;;  %v1140_v33 = vmul.f32 %v3678_v52, %v3078_v57  ;;  %v1226_v63 = vmul.f32 %v3679_v7, %v3081_v28  ;;  %v922_v2 = vmul.f32 %v2656_v15, %v918_v8 }
  0xc2   : > { %v1069_v3 = vadd.f32 %v1053_v56, %v983_v24  ;;  %v924_v35 = vrot.slane %v2171_v43, 5  ;;  %v958_v10 = vrot.slane %v908_v12, %v2475_v45  ;;  %v1028_v20 = vrot.slane %v916_v31, %v2478_v46 }
  0xc3   : > { %v1070_v14 = vadd.f32 %v1054_v22, %v984_v16  ;;  %v1114_v39 = vrot.slane %v922_v2, %v2481_v47  ;;  %v962_v1 = vrot.slane %v908_v12, %v2487_v49  ;;  %v1032_v52 = vrot.slane %v916_v31, %v3669_v61  ;;  %v3687_v61 = vld [vmem:[#allocation29_spill] sm:$0xff]  ;;  %v3703_v49 = vld [vmem:[#allocation46_spill] sm:$0xff] }
  0xc4   : > { %v1155_v53 = vadd.f32 %v1139_v29, %v1069_v3  ;;  %v928_v7 = vmul.f32 %v2666_v36, %v924_v35  ;;  %v3106_v15 = vrot.slane %v958_v10, %v2475_v45  ;;  %v3109_v43 = vrot.slane %v1028_v20, %v2478_v46  ;;  %v3680_v29 = vld [vmem:[#allocation24_spill] sm:$0xff]  ;;  %v3681_v35 = vld [vmem:[#allocation26_spill] sm:$0xff]  ;;  %v3683_v10 = vld [vmem:[#allocation25_spill] sm:$0xff] }
  0xc5   : > { %v1156_v8 = vadd.f32 %v1140_v33, %v1070_v14  ;;  %v3112_v24 = vrot.slane %v1114_v39, %v2481_v47  ;;  %v3115_v16 = vrot.slane %v962_v1, %v2475_v45  ;;  %v3118_v12 = vrot.slane %v1032_v52, %v2478_v46  ;;  %v3682_v33 = vld [vmem:[#allocation30_spill] sm:$0xff]  ;;  %v3684_v39 = vld [vmem:[#allocation27_spill] sm:$0xff]  ;;  %v3701_v46 = vld [vmem:[#allocation44_spill] sm:$0xff] }
  0xc6   : > { %v1241_v56 = vadd.f32 %v1225_v18, %v1155_v53  ;;  %v985_v36 = vmul.f32 %v3106_v15, %v3680_v29  ;;  %v1055_v31 = vmul.f32 %v3681_v35, %v3109_v43  ;;  %v1200_v20 = vrot.slane %v928_v7, %v2484_v48 }
  0xc7   : > { %v1242_v22 = vadd.f32 %v1226_v63, %v1156_v8  ;;  %v1141_v3 = vmul.f32 %v3682_v33, %v3112_v24  ;;  %v986_v14 = vmul.f32 %v3115_v16, %v3683_v10  ;;  %v1056_v1 = vmul.f32 %v3684_v39, %v3118_v12  ;;  %v3685_v8 = vld [vmem:[#allocation23_spill] sm:$0xff]  ;;  %v3686_v33 = vld [vmem:[#allocation28_spill] sm:$0xff] }
  0xc8   : > { %1972 = vst [vmem:[%s2722_s23 + $0x80] sm:$0xff] %v1241_v56  ;;  %v1071_v53 = vadd.f32 %v1055_v31, %v985_v36  ;;  %v3133_v18 = vrot.slane %v1200_v20, %v2484_v48  ;;  %v1118_v52 = vrot.slane %v922_v2, %v3670_v59  ;;  %v1204_v29 = vrot.slane %v928_v7, %v3671_v54  ;;  %v3688_v36 = vld [vmem:[#allocation31_spill] sm:$0xff] }
  0xc9   : > { %1973 = vst [vmem:[%s2722_s23 + $0x88] sm:$0xff] %v1242_v22  ;;  %v1072_v63 = vadd.f32 %v1056_v1, %v986_v14  ;;  %v987_v35 = vmul.f32 %v3050_v13, %v3685_v8  ;;  %v1057_v10 = vmul.f32 %v3686_v33, %v3064_v30  ;;  %v1143_v39 = vmul.f32 %v3687_v61, %v3067_v0  ;;  %v3689_v22 = vld [vmem:[#allocation33_spill] sm:$0xff]  ;;  %v3690_v1 = vld [vmem:[#allocation35_spill] sm:$0xff]  ;;  %v3691_v61 = vld [vmem:[#allocation36_spill] sm:$0xff] }
  0xca   : > { %v1157_v56 = vadd.f32 %v1141_v3, %v1071_v53  ;;  %v1227_v31 = vmul.f32 %v3688_v36, %v3133_v18  ;;  %v3147_v2 = vrot.slane %v1118_v52, %v2481_v47  ;;  %v3150_v7 = vrot.slane %v1204_v29, %v2484_v48  ;;  %v3692_v33 = vld [vmem:[#allocation32_spill] sm:$0xff]  ;;  %v3693_v52 = vld [vmem:[#allocation34_spill] sm:$0xff]  ;;  %v3694_v29 = vld [vmem:[#allocation37_spill] sm:$0xff] }
  0xcb   : > { %v1073_v20 = vadd.f32 %v1057_v10, %v987_v35  ;;  %v1229_v14 = vmul.f32 %v3689_v22, %v3070_v27  ;;  %v988_v8 = vmul.f32 %v3056_v40, %v3690_v1  ;;  %v1058_v3 = vmul.f32 %v3691_v61, %v3075_v9  ;;  %v3695_v22 = vld [vmem:[#allocation38_spill] sm:$0xff]  ;;  %v3696_v1 = vld [vmem:[#allocation39_spill] sm:$0xff] }
  0xcc   : > { %v1243_v53 = vadd.f32 %v1227_v31, %v1157_v56  ;;  %v1142_v36 = vmul.f32 %v3692_v33, %v3147_v2  ;;  %v1228_v54 = vmul.f32 %v3693_v52, %v3150_v7  ;;  %v1144_v59 = vmul.f32 %v3694_v29, %v3078_v57  ;;  %v3697_v31 = vld [vmem:[#allocation40_spill] sm:$0xff]  ;;  %v3698_v33 = vld [vmem:[#allocation41_spill] sm:$0xff]  ;;  %v3699_v29 = vld [vmem:[#allocation42_spill] sm:$0xff] }
  0xcd   : > { %v1159_v35 = vadd.f32 %v1143_v39, %v1073_v20  ;;  %v1074_v10 = vadd.f32 %v1058_v3, %v988_v8  ;;  %v1230_v48 = vmul.f32 %v3695_v22, %v3081_v28  ;;  %v989_v47 = vmul.f32 %v3106_v15, %v3696_v1  ;;  %v3700_v3 = vld [vmem:[#allocation43_spill] sm:$0xff]  ;;  %v3702_v1 = vld [vmem:[#allocation45_spill] sm:$0xff] }
  0xce   : > { %1974 = vst [vmem:[%s2722_s23 + $0x90] sm:$0xff] %v1243_v53  ;;  %v1158_v56 = vadd.f32 %v1142_v36, %v1072_v63  ;;  %v1059_v61 = vmul.f32 %v3697_v31, %v3109_v43  ;;  %v1145_v52 = vmul.f32 %v3698_v33, %v3112_v24  ;;  %v1231_v39 = vmul.f32 %v3699_v29, %v3133_v18 }
  0xcf   : > { %v1245_v20 = vadd.f32 %v1229_v14, %v1159_v35  ;;  %v1160_v8 = vadd.f32 %v1144_v59, %v1074_v10  ;;  %v990_v22 = vmul.f32 %v3115_v16, %v3700_v3  ;;  %v1060_v53 = vmul.f32 %v3701_v46, %v3118_v12  ;;  %v3704_v14 = vld [vmem:[#allocation47_spill] sm:$0xff]  ;;  %v3705_v35 = vld [vmem:[#allocation48_spill] sm:$0xff]  ;;  %v3706_v46 = vld [vmem:[#allocation49_spill] sm:$0xff] }
  0xd0   : > { %v1244_v63 = vadd.f32 %v1228_v54, %v1158_v56  ;;  %v1075_v36 = vadd.f32 %v1059_v61, %v989_v47  ;;  %v1146_v31 = vmul.f32 %v3702_v1, %v3147_v2  ;;  %v1232_v33 = vmul.f32 %v3703_v49, %v3150_v7  ;;  %v3707_v54 = vld [vmem:[#allocation50_spill] sm:$0xff]  ;;  %v3708_v61 = vld [vmem:[#allocation51_spill] sm:$0xff] }
  0xd1   : > { %1976 = vst [vmem:[%s2722_s23 + $0xa0] sm:$0xff] %v1245_v20  ;;  %v1246_v45 = vadd.f32 %v1230_v48, %v1160_v8  ;;  %v1076_v29 = vadd.f32 %v1060_v53, %v990_v22  ;;  %v991_v59 = vmul.f32 %v3050_v13, %v3704_v14  ;;  %v1061_v10 = vmul.f32 %v3705_v35, %v3064_v30  ;;  %v3709_v8 = vld [vmem:[#allocation52_spill] sm:$0xff]  ;;  %v3710_v53 = vld [vmem:[#allocation53_spill] sm:$0xff]  ;;  %v3712_v14 = vld [vmem:[#allocation55_spill] sm:$0xff] }
  0xd2   : > { %1975 = vst [vmem:[%s2722_s23 + $0x98] sm:$0xff] %v1244_v63  ;;  %v1161_v3 = vadd.f32 %v1145_v52, %v1075_v36  ;;  %v1147_v47 = vmul.f32 %v3706_v46, %v3067_v0  ;;  %v1233_v56 = vmul.f32 %v3707_v54, %v3070_v27  ;;  %v992_v49 = vmul.f32 %v3056_v40, %v3708_v61  ;;  %v3711_v36 = vld [vmem:[#allocation54_spill] sm:$0xff]  ;;  %v3713_v46 = vld [vmem:[#allocation56_spill] sm:$0xff] }
  0xd3   : > { %1977 = vst [vmem:[%s2722_s23 + $0xa8] sm:$0xff] %v1246_v45  ;;  %v1162_v48 = vadd.f32 %v1146_v31, %v1076_v29  ;;  %v1077_v20 = vadd.f32 %v1061_v10, %v991_v59  ;;  %v1062_v22 = vmul.f32 %v3709_v8, %v3075_v9  ;;  %v1148_v52 = vmul.f32 %v3710_v53, %v3078_v57  ;;  %v3714_v59 = vld [vmem:[#allocation57_spill] sm:$0xff]  ;;  %v3716_v8 = vld [vmem:[#allocation59_spill] sm:$0xff] }
  0xd4   : > { %v1247_v63 = vadd.f32 %v1231_v39, %v1161_v3  ;;  %v1234_v1 = vmul.f32 %v3711_v36, %v3081_v28  ;;  %v993_v35 = vmul.f32 %v3106_v15, %v3712_v14  ;;  %v1063_v54 = vmul.f32 %v3713_v46, %v3109_v43  ;;  %v3715_v39 = vld [vmem:[#allocation58_spill] sm:$0xff] }
  0xd5   : > { %v1248_v45 = vadd.f32 %v1232_v33, %v1162_v48  ;;  %v1163_v31 = vadd.f32 %v1147_v47, %v1077_v20  ;;  %v1078_v29 = vadd.f32 %v1062_v22, %v992_v49  ;;  %v1149_v10 = vmul.f32 %v3714_v59, %v3112_v24  ;;  %v3717_v47 = vld [vmem:[#allocation60_spill] sm:$0xff]  ;;  %v3718_v48 = vld [vmem:[#allocation61_spill] sm:$0xff] }
  0xd6   : > { %1978 = vst [vmem:[%s2722_s23 + $0xb0] sm:$0xff] %v1247_v63  ;;  %v1079_v61 = vadd.f32 %v1063_v54, %v993_v35  ;;  %v1235_v3 = vmul.f32 %v3715_v39, %v3133_v18  ;;  %v994_v53 = vmul.f32 %v3115_v16, %v3716_v8  ;;  %v1064_v36 = vmul.f32 %v2887_v44, %v3118_v12  ;;  %v3722_v39 = vld [vmem:[#allocation7_spill] sm:$0xff] }
  0xd7   : > { %1979 = vst [vmem:[%s2722_s23 + $0xb8] sm:$0xff] %v1248_v45  ;;  %v1249_v14 = vadd.f32 %v1233_v56, %v1163_v31  ;;  %v1164_v33 = vadd.f32 %v1148_v52, %v1078_v29  ;;  %v1150_v49 = vmul.f32 %v3717_v47, %v3147_v2  ;;  %v1236_v20 = vmul.f32 %v3718_v48, %v3150_v7  ;;  %v1395_v8 = vld [vmem:[%s2570_s19] sm:$0xff]  ;;  %v3725_v47 = vld [vmem:[#allocation9_spill] sm:$0xff]  ;;  %v3726_v48 = vld [vmem:[#allocation10_spill] sm:$0xff] }
  0xd8   : > { %v1165_v22 = vadd.f32 %v1149_v10, %v1079_v61  ;;  %v1080_v63 = vadd.f32 %v1064_v36, %v994_v53  ;;  %v995_v35 = vmul.f32 %v3050_v13, %v2900_v42  ;;  %v1065_v46 = vmul.f32 %v2910_v50, %v3064_v30  ;;  %v3719_v42 = vld [vmem:[#allocation62_spill] sm:$0xff]  ;;  %v3721_v10 = vld [vmem:[#allocation63_spill] sm:$0xff] }
  0xd9   : > { %1980 = vst [vmem:[%s2722_s23 + $0xc0] sm:$0xff] %v1249_v14  ;;  %v1250_v44 = vadd.f32 %v1234_v1, %v1164_v33  ;;  %v1151_v56 = vmul.f32 %v2913_v32, %v3067_v0  ;;  %v1237_v52 = vmul.f32 %v2918_v25, %v3070_v27  ;;  %v996_v54 = vmul.f32 %v3056_v40, %v2921_v6  ;;  %v3723_v53 = vld [vmem:[#allocation11_spill] sm:$0xff] }
  0xda   : > { %v1251_v45 = vadd.f32 %v1235_v3, %v1165_v22  ;;  %v1166_v31 = vadd.f32 %v1150_v49, %v1080_v63  ;;  %v1081_v29 = vadd.f32 %v1065_v46, %v995_v35  ;;  %v1066_v13 = vmul.f32 %v3719_v42, %v3075_v9  ;;  %v2018_v22 = vld [vmem:[%s2570_s19 + $0x100] sm:$0xff]  ;;  %v3727_v46 = vld [vmem:[#allocation12_spill] sm:$0xff] }
  0xdb   : > { %1981 = vst [vmem:[%s2722_s23 + $0xc8] sm:$0xff] %v1250_v44  ;;  %v1152_v50 = vmul.f32 %v2933_v4, %v3078_v57  ;;  %v1238_v32 = vmul.f32 %v2939_v41, %v3081_v28  ;;  %v997_v25 = vmul.f32 %v3106_v15, %v2942_v21  ;;  %v1067_v6 = vmul.f32 %v2945_v51, %v3109_v43  ;;  %v2034_v63 = vld [vmem:[%s2570_s19 + $0x180] sm:$0xff] }
  0xdc   : > { %1982 = vst [vmem:[%s2722_s23 + $0xd0] sm:$0xff] %v1251_v45  ;;  %v1252_v40 = vadd.f32 %v1236_v20, %v1166_v31  ;;  %v1167_v30 = vadd.f32 %v1151_v56, %v1081_v29  ;;  %v1082_v0 = vadd.f32 %v1066_v13, %v996_v54  ;;  %v1153_v27 = vmul.f32 %v2957_v37, %v3112_v24  ;;  %v2002_v20 = vld [vmem:[%s2570_s19 + $0x80] sm:$0xff]  ;;  %v3728_v56 = vld [vmem:[#allocation13_spill] sm:$0xff]  ;;  %v3729_v54 = vld [vmem:[#allocation14_spill] sm:$0xff] }
  0xdd   : > { %v1083_v9 = vadd.f32 %v1067_v6, %v997_v25  ;;  %v1239_v4 = vmul.f32 %v2960_v58, %v3133_v18  ;;  %v998_v41 = vmul.f32 %v3115_v16, %v2966_v38  ;;  %v1068_v21 = vmul.f32 %v2969_v62, %v3118_v12  ;;  %v2019_v25 = vld [vmem:[%s2570_s19 + $0x108] sm:$0xff] }
  0xde   : > { %1983 = vst [vmem:[%s2722_s23 + $0xd8] sm:$0xff] %v1252_v40  ;;  %v1253_v51 = vadd.f32 %v1237_v52, %v1167_v30  ;;  %v1168_v57 = vadd.f32 %v1152_v50, %v1082_v0  ;;  %v1154_v28 = vmul.f32 %v2978_v19, %v3147_v2  ;;  %v1240_v37 = vmul.f32 %v2981_v60, %v3150_v7  ;;  %v2175_v60 = vpop.eup %2174  ;;  %v2035_v6 = vld [vmem:[%s2570_s19 + $0x188] sm:$0xff] }
  0xdf   : > { %v1169_v15 = vadd.f32 %v1153_v27, %v1083_v9  ;;  %v1084_v58 = vadd.f32 %v1068_v21, %v998_v41  ;;  %v3720_v38 = vrot.slane %v3034_v26, 10  ;;  %v2001_v24 = vrot.slane %v3099_v17, 11  ;;  %v3730_v21 = vld [vmem:[#allocation64_spill] sm:$0xff] }
  0xe0   : > { %1984 = vst [vmem:[%s2722_s23 + $0xe0] sm:$0xff] %v1253_v51  ;;  %v1254_v62 = vadd.f32 %v1238_v32, %v1168_v57  ;;  %v1373_v34 = vmul.f32 %v2175_v60, %v2683_v11  ;;  %v1383_v2 = vrot.slane %v2175_v60, 6  ;;  %v1389_v7 = vrot.slane %v2175_v60, 5  ;;  %v3724_v11 = vld [vmem:[#allocation8_spill] sm:$0xff]  ;;  %v1399_v57 = vld [vmem:[%s2570_s19 + $0x20] sm:$0xff] }
  0xe1   : > { %v1360_v43 = vadd.f32 %v3720_v38, %v3040_v55  ;;  %v1255_v16 = vadd.f32 %v1239_v4, %v1169_v15  ;;  %v1170_v12 = vadd.f32 %v1154_v28, %v1084_v58  ;;  %v1377_v55 = vrot.slane %v2175_v60, 7  ;;  %v2003_v32 = vld [vmem:[%s2570_s19 + $0x88] sm:$0xff] }
  0xe2   : > { %1985 = vst [vmem:[%s2722_s23 + $0xe8] sm:$0xff] %v1254_v62  ;;  %v1387_v59 = vmul.f32 %v3021_v5, %v1383_v2  ;;  %v1393_v61 = vmul.f32 %v3721_v10, %v1389_v7  ;;  %v1416_v3 = vrot.slane %v1373_v34, %v3722_v39  ;;  %v1420_v36 = vrot.slane %v1373_v34, %v3723_v53  ;;  %v1396_v5 = vld [vmem:[%s2570_s19 + $0x8] sm:$0xff] }
  0xe3   : > { %v1370_v19 = vadd.f32 %v2001_v24, %v1360_v43  ;;  %1986 = vst [vmem:[%s2722_s23 + $0xf0] sm:$0xff] %v1255_v16  ;;  %v1256_v18 = vadd.f32 %v1240_v37, %v1170_v12  ;;  %v1381_v1 = vmul.f32 %v3019_v23, %v1377_v55  ;;  %v3731_v12 = vld [vmem:[#allocation65_spill] sm:$0xff] }
  0xe4   : > { %v3273_v14 = vrot.slane %v1416_v3, %v3722_v39  ;;  %v1572_v49 = vrot.slane %v1387_v59, %v3725_v47  ;;  %v1658_v23 = vrot.slane %v1393_v61, %v3726_v48  ;;  %v3283_v35 = vrot.slane %v1420_v36, %v3722_v39 }
  0xe5   : > { %1987 = vst [vmem:[%s2722_s23 + $0xf8] sm:$0xff] %v1256_v18  ;;  %2176 = vrcp.f32 %v1370_v19  ;;  %v1486_v33 = vrot.slane %v1381_v1, %v3724_v11  ;;  %v1490_v44 = vrot.slane %v1381_v1, %v3727_v46  ;;  %v1576_v52 = vrot.slane %v1387_v59, %v3728_v56  ;;  %v1397_v18 = vld [vmem:[%s2570_s19 + $0x10] sm:$0xff]  ;;  %v1398_v59 = vld [vmem:[%s2570_s19 + $0x18] sm:$0xff] }
  0xe6   : > { %v1662_v45 = vrot.slane %v1393_v61, %v3729_v54  ;;  %v1449_v29 = vmul.f32 %v3273_v14, %v1395_v8  ;;  %v3293_v13 = vrot.slane %v1572_v49, %v3725_v47  ;;  %v3296_v50 = vrot.slane %v1658_v23, %v3726_v48  ;;  %v2004_v61 = vld [vmem:[%s2570_s19 + $0x90] sm:$0xff]  ;;  %v2005_v49 = vld [vmem:[%s2570_s19 + $0x98] sm:$0xff]  ;;  %v2006_v23 = vld [vmem:[%s2570_s19 + $0xa0] sm:$0xff] }
  0xe7   : > { %v3290_v42 = vrot.slane %v1486_v33, %v3724_v11  ;;  %v1450_v40 = vmul.f32 %v3283_v35, %v1396_v5  ;;  %v3303_v30 = vrot.slane %v1490_v44, %v3724_v11  ;;  %v3306_v0 = vrot.slane %v1576_v52, %v3725_v47  ;;  %v2022_v5 = vld [vmem:[%s2570_s19 + $0x120] sm:$0xff] }
  0xe8   : > { %v3309_v27 = vrot.slane %v1662_v45, %v3726_v48  ;;  %v1605_v4 = vmul.f32 %v2018_v22, %v3293_v13  ;;  %v1691_v41 = vmul.f32 %v2034_v63, %v3296_v50  ;;  %v1453_v34 = vmul.f32 %v3273_v14, %v1399_v57  ;;  %v2020_v22 = vld [vmem:[%s2570_s19 + $0x110] sm:$0xff] }
  0xe9   : > { %v1519_v9 = vmul.f32 %v2002_v20, %v3290_v42  ;;  %v1520_v28 = vmul.f32 %v2003_v32, %v3303_v30  ;;  %v1606_v37 = vmul.f32 %v2019_v25, %v3306_v0  ;;  %v2036_v63 = vld [vmem:[%s2570_s19 + $0x190] sm:$0xff]  ;;  %v2038_v25 = vld [vmem:[%s2570_s19 + $0x1a0] sm:$0xff] }
  0xea   : > { %v1692_v15 = vmul.f32 %v2035_v6, %v3309_v27 }
  0xeb   : > { %v1535_v38 = vadd.f32 %v1519_v9, %v1449_v29  ;;  %v1536_v16 = vadd.f32 %v1520_v28, %v1450_v40  ;;  %v2037_v40 = vld [vmem:[%s2570_s19 + $0x198] sm:$0xff]  ;;  %v1523_v9 = vmul.f32 %v2006_v23, %v3290_v42  ;;  %v2023_v28 = vld [vmem:[%s2570_s19 + $0x128] sm:$0xff] }
  0xed   : > { %v1621_v55 = vadd.f32 %v1605_v4, %v1535_v38  ;;  %v1622_v10 = vadd.f32 %v1606_v37, %v1536_v16  ;;  %v1609_v4 = vmul.f32 %v2022_v5, %v3293_v13  ;;  %v2039_v37 = vld [vmem:[%s2570_s19 + $0x1a8] sm:$0xff]  ;;  %v1539_v38 = vadd.f32 %v1523_v9, %v1453_v34 }
  0xee   : > { %v1610_v34 = vmul.f32 %v2023_v28, %v3306_v0 }
  0xef   : > { %v2177_v31 = vpop.eup %2176  ;;  %v1707_v36 = vadd.f32 %v1691_v41, %v1621_v55  ;;  %v1708_v20 = vadd.f32 %v1692_v15, %v1622_v10  ;;  %v1400_v41 = vld [vmem:[%s2570_s19 + $0x28] sm:$0xff]  ;;  %v1625_v55 = vadd.f32 %v1609_v4, %v1539_v38 }
  0xf0   : > { %v1374_v51 = vmul.f32 %v2177_v31, %v3730_v21  ;;  %v1378_v58 = vrot.slane %v2177_v31, 7  ;;  %v1384_v43 = vrot.slane %v2177_v31, 6  ;;  %v1390_v62 = vrot.slane %v2177_v31, 5  ;;  %v2021_v31 = vld [vmem:[%s2570_s19 + $0x118] sm:$0xff]  ;;  %v2007_v21 = vld [vmem:[%s2570_s19 + $0xa8] sm:$0xff] }
  0xf1   : > { %2050 = vst [vmem:[%s2722_s23 + $0x100] sm:$0xff] %v1707_v36  ;;  %2051 = vst [vmem:[%s2722_s23 + $0x108] sm:$0xff] %v1708_v20  ;;  %v2025_v36 = vld [vmem:[%s2570_s19 + $0x138] sm:$0xff]  ;;  %v2010_v20 = vld [vmem:[%s2570_s19 + $0xc0] sm:$0xff] }
  0xf2   : > { %v1424_v24 = vrot.slane %v1374_v51, %v3722_v39  ;;  %v1382_v19 = vmul.f32 %v3731_v12, %v1378_v58  ;;  %v1428_v60 = vrot.slane %v1374_v51, %v3723_v53  ;;  %v1388_v2 = vmul.f32 %v3034_v26, %v1384_v43 }
  0xf3   : > { %v1394_v7 = vmul.f32 %v3099_v17, %v1390_v62  ;;  %v1695_v43 = vmul.f32 %v2038_v25, %v3296_v50  ;;  %v1401_v62 = vld [vmem:[%s2570_s19 + $0x30] sm:$0xff]  ;;  %v1524_v12 = vmul.f32 %v2007_v21, %v3303_v30  ;;  %v1404_v25 = vld [vmem:[%s2570_s19 + $0x48] sm:$0xff]  ;;  %v1527_v28 = vmul.f32 %v2010_v20, %v3290_v42 }
  0xf4   : > { %v3327_v1 = vrot.slane %v1424_v24, %v3722_v39  ;;  %v1494_v3 = vrot.slane %v1382_v19, %v3724_v11  ;;  %v3333_v8 = vrot.slane %v1428_v60, %v3722_v39  ;;  %v1498_v53 = vrot.slane %v1382_v19, %v3727_v46  ;;  %v2008_v24 = vld [vmem:[%s2570_s19 + $0xb0] sm:$0xff]  ;;  %v2043_v21 = vld [vmem:[%s2570_s19 + $0x1c8] sm:$0xff] }
  0xf5   : > { %v1580_v17 = vrot.slane %v1388_v2, %v3725_v47  ;;  %v1666_v33 = vrot.slane %v1394_v7, %v3726_v48  ;;  %v1584_v29 = vrot.slane %v1388_v2, %v3728_v56  ;;  %v1670_v32 = vrot.slane %v1394_v7, %v3729_v54  ;;  %v2024_v19 = vld [vmem:[%s2570_s19 + $0x130] sm:$0xff]  ;;  %v1402_v7 = vld [vmem:[%s2570_s19 + $0x38] sm:$0xff] }
  0xf6   : > { %v1451_v26 = vmul.f32 %v3327_v1, %v1397_v18  ;;  %v3343_v39 = vrot.slane %v1494_v3, %v3724_v11  ;;  %v1452_v46 = vmul.f32 %v3333_v8, %v1398_v59  ;;  %v3349_v44 = vrot.slane %v1498_v53, %v3724_v11  ;;  %v2040_v18 = vld [vmem:[%s2570_s19 + $0x1b0] sm:$0xff]  ;;  %v2009_v59 = vld [vmem:[%s2570_s19 + $0xb8] sm:$0xff] }
  0xf7   : > { %v3353_v52 = vrot.slane %v1580_v17, %v3725_v47  ;;  %v3356_v45 = vrot.slane %v1666_v33, %v3726_v48  ;;  %v3373_v51 = vrot.slane %v1584_v29, %v3725_v47  ;;  %v3376_v57 = vrot.slane %v1670_v32, %v3726_v48  ;;  %v1403_v17 = vld [vmem:[%s2570_s19 + $0x40] sm:$0xff] }
  0xf8   : > { %v1521_v6 = vmul.f32 %v2004_v61, %v3343_v39  ;;  %v1522_v11 = vmul.f32 %v2005_v49, %v3349_v44  ;;  %v1454_v48 = vmul.f32 %v3283_v35, %v1400_v41  ;;  %v1696_v2 = vmul.f32 %v2039_v37, %v3309_v27  ;;  %v2042_v32 = vld [vmem:[%s2570_s19 + $0x1c0] sm:$0xff]  ;;  %v2027_v41 = vld [vmem:[%s2570_s19 + $0x148] sm:$0xff] }
  0xf9   : > { %v1607_v56 = vmul.f32 %v2020_v22, %v3353_v52  ;;  %v1693_v54 = vmul.f32 %v2036_v63, %v3356_v45  ;;  %v1608_v16 = vmul.f32 %v2021_v31, %v3373_v51  ;;  %v1694_v47 = vmul.f32 %v2037_v40, %v3376_v57  ;;  %v2026_v22 = vld [vmem:[%s2570_s19 + $0x140] sm:$0xff] }
  0xfa   : > { %v1537_v15 = vadd.f32 %v1521_v6, %v1451_v26  ;;  %v1538_v58 = vadd.f32 %v1522_v11, %v1452_v46  ;;  %v1540_v61 = vadd.f32 %v1524_v12, %v1454_v48  ;;  %v1455_v3 = vmul.f32 %v3327_v1, %v1401_v62  ;;  %v2041_v26 = vld [vmem:[%s2570_s19 + $0x1b8] sm:$0xff]  ;;  %v2011_v6 = vld [vmem:[%s2570_s19 + $0xc8] sm:$0xff] }
  0xfb   : > { %v1525_v53 = vmul.f32 %v2008_v24, %v3343_v39  ;;  %v1711_v49 = vadd.f32 %v1695_v43, %v1625_v55  ;;  %v1611_v23 = vmul.f32 %v2024_v19, %v3353_v52  ;;  %v1697_v5 = vmul.f32 %v2040_v18, %v3356_v45  ;;  %v1406_v48 = vld [vmem:[%s2570_s19 + $0x58] sm:$0xff] }
  0xfc   : > { %v1623_v60 = vadd.f32 %v1607_v56, %v1537_v15  ;;  %v1624_v10 = vadd.f32 %v1608_v16, %v1538_v58  ;;  %v1626_v46 = vadd.f32 %v1610_v34, %v1540_v61  ;;  %v1456_v29 = vmul.f32 %v3333_v8, %v1402_v7  ;;  %v1405_v15 = vld [vmem:[%s2570_s19 + $0x50] sm:$0xff]  ;;  %v2013_v55 = vld [vmem:[%s2570_s19 + $0xd8] sm:$0xff] }
  0xfd   : > { %v1541_v31 = vadd.f32 %v1525_v53, %v1455_v3  ;;  %2054 = vst [vmem:[%s2722_s23 + $0x120] sm:$0xff] %v1711_v49  ;;  %v1526_v11 = vmul.f32 %v2009_v59, %v3349_v44  ;;  %v1612_v40 = vmul.f32 %v2025_v36, %v3373_v51  ;;  %v1698_v9 = vmul.f32 %v2041_v26, %v3376_v57  ;;  %v2012_v58 = vld [vmem:[%s2570_s19 + $0xd0] sm:$0xff]  ;;  %v2045_v61 = vld [vmem:[%s2570_s19 + $0x1d8] sm:$0xff]  ;;  %v1407_v3 = vld [vmem:[%s2570_s19 + $0x60] sm:$0xff] }
  0xfe   : > { %v1709_v33 = vadd.f32 %v1693_v54, %v1623_v60  ;;  %v1710_v63 = vadd.f32 %v1694_v47, %v1624_v10  ;;  %v1457_v4 = vmul.f32 %v3273_v14, %v1403_v17  ;;  %v1712_v56 = vadd.f32 %v1696_v2, %v1626_v46  ;;  %v2028_v16 = vld [vmem:[%s2570_s19 + $0x150] sm:$0xff]  ;;  %v2029_v10 = vld [vmem:[%s2570_s19 + $0x158] sm:$0xff]  ;;  %v1408_v49 = vld [vmem:[%s2570_s19 + $0x68] sm:$0xff] }
  0xff   : > { %v1627_v54 = vadd.f32 %v1611_v23, %v1541_v31  ;;  %v1613_v37 = vmul.f32 %v2026_v22, %v3293_v13  ;;  %v1542_v38 = vadd.f32 %v1526_v11, %v1456_v29  ;;  %v1699_v43 = vmul.f32 %v2042_v32, %v3296_v50  ;;  %v2044_v47 = vld [vmem:[%s2570_s19 + $0x1d0] sm:$0xff]  ;;  %v2046_v46 = vld [vmem:[%s2570_s19 + $0x1e0] sm:$0xff]  ;;  %v2015_v31 = vld [vmem:[%s2570_s19 + $0xe8] sm:$0xff] }
 0x100   : > { %2052 = vst [vmem:[%s2722_s23 + $0x110] sm:$0xff] %v1709_v33  ;;  %2053 = vst [vmem:[%s2722_s23 + $0x118] sm:$0xff] %v1710_v63  ;;  %v1458_v62 = vmul.f32 %v3283_v35, %v1404_v25  ;;  %v1528_v24 = vmul.f32 %v2011_v6, %v3303_v30  ;;  %v1543_v19 = vadd.f32 %v1527_v28, %v1457_v4  ;;  %v2014_v33 = vld [vmem:[%s2570_s19 + $0xe0] sm:$0xff]  ;;  %v2031_v11 = vld [vmem:[%s2570_s19 + $0x168] sm:$0xff] }
 0x101   : > { %2055 = vst [vmem:[%s2722_s23 + $0x128] sm:$0xff] %v1712_v56  ;;  %v1713_v12 = vadd.f32 %v1697_v5, %v1627_v54  ;;  %v1614_v18 = vmul.f32 %v2027_v41, %v3306_v0  ;;  %v1700_v60 = vmul.f32 %v2043_v21, %v3309_v27  ;;  %v1628_v34 = vadd.f32 %v1612_v40, %v1542_v38  ;;  %v2030_v63 = vld [vmem:[%s2570_s19 + $0x160] sm:$0xff]  ;;  %v2047_v21 = vld [vmem:[%s2570_s19 + $0x1e8] sm:$0xff]  ;;  %v1409_v56 = vld [vmem:[%s2570_s19 + $0x70] sm:$0xff] }
 0x102   : > { %v1544_v2 = vadd.f32 %v1528_v24, %v1458_v62  ;;  %v1459_v7 = vmul.f32 %v3327_v1, %v1405_v15  ;;  %v1529_v59 = vmul.f32 %v2012_v58, %v3343_v39  ;;  %v1629_v53 = vadd.f32 %v1613_v37, %v1543_v19  ;;  %v2016_v54 = vld [vmem:[%s2570_s19 + $0xf0] sm:$0xff] }
 0x103   : > { %2056 = vst [vmem:[%s2722_s23 + $0x130] sm:$0xff] %v1713_v12  ;;  %v1615_v36 = vmul.f32 %v2028_v16, %v3353_v52  ;;  %v1701_v26 = vmul.f32 %v2044_v47, %v3356_v45  ;;  %v1460_v17 = vmul.f32 %v3333_v8, %v1406_v48  ;;  %v1714_v23 = vadd.f32 %v1698_v9, %v1628_v34  ;;  %v2032_v58 = vld [vmem:[%s2570_s19 + $0x170] sm:$0xff]  ;;  %v1410_v16 = vld [vmem:[%s2570_s19 + $0x78] sm:$0xff] }
 0x104   : > { %v1630_v5 = vadd.f32 %v1614_v18, %v1544_v2  ;;  %v1545_v20 = vadd.f32 %v1529_v59, %v1459_v7  ;;  %v1530_v22 = vmul.f32 %v2013_v55, %v3349_v44  ;;  %v1715_v29 = vadd.f32 %v1699_v43, %v1629_v53  ;;  %v2048_v38 = vld [vmem:[%s2570_s19 + $0x1f0] sm:$0xff]  ;;  %v2017_v47 = vld [vmem:[%s2570_s19 + $0xf8] sm:$0xff] }
 0x105   : > { %v1616_v32 = vmul.f32 %v2029_v10, %v3373_v51  ;;  %v1702_v25 = vmul.f32 %v2045_v61, %v3376_v57  ;;  %v1461_v6 = vmul.f32 %v3273_v14, %v1407_v3  ;;  %2057 = vst [vmem:[%s2722_s23 + $0x138] sm:$0xff] %v1714_v23  ;;  %v1531_v41 = vmul.f32 %v2014_v33, %v3290_v42  ;;  %v2033_v48 = vld [vmem:[%s2570_s19 + $0x178] sm:$0xff] }
 0x106   : > { %v1716_v40 = vadd.f32 %v1700_v60, %v1630_v5  ;;  %v1631_v9 = vadd.f32 %v1615_v36, %v1545_v20  ;;  %v1546_v4 = vadd.f32 %v1530_v22, %v1460_v17  ;;  %2058 = vst [vmem:[%s2722_s23 + $0x140] sm:$0xff] %v1715_v29  ;;  %v1617_v28 = vmul.f32 %v2030_v63, %v3293_v13  ;;  %v2049_v60 = vld [vmem:[%s2570_s19 + $0x1f8] sm:$0xff] }
 0x107   : > { %v1703_v37 = vmul.f32 %v2046_v46, %v3296_v50  ;;  %v1462_v14 = vmul.f32 %v3283_v35, %v1408_v49  ;;  %v1532_v15 = vmul.f32 %v2015_v31, %v3303_v30  ;;  %v1547_v62 = vadd.f32 %v1531_v41, %v1461_v6 }
 0x108   : > { %2059 = vst [vmem:[%s2722_s23 + $0x148] sm:$0xff] %v1716_v40  ;;  %v1717_v42 = vadd.f32 %v1701_v26, %v1631_v9  ;;  %v1632_v43 = vadd.f32 %v1616_v32, %v1546_v4  ;;  %v1618_v24 = vmul.f32 %v2031_v11, %v3306_v0  ;;  %v1704_v50 = vmul.f32 %v2047_v21, %v3309_v27 }
 0x109   : > { %v1548_v13 = vadd.f32 %v1532_v15, %v1462_v14  ;;  %v1463_v35 = vmul.f32 %v3327_v1, %v1409_v56  ;;  %v1533_v30 = vmul.f32 %v2016_v54, %v3343_v39  ;;  %v1633_v19 = vadd.f32 %v1617_v28, %v1547_v62 }
 0x10a   : > { %2060 = vst [vmem:[%s2722_s23 + $0x150] sm:$0xff] %v1717_v42  ;;  %v1718_v12 = vadd.f32 %v1702_v25, %v1632_v43  ;;  %v1619_v18 = vmul.f32 %v2032_v58, %v3353_v52  ;;  %v1705_v0 = vmul.f32 %v2048_v38, %v3356_v45  ;;  %v1464_v27 = vmul.f32 %v3333_v8, %v1410_v16 }
 0x10b   : > { %v1634_v55 = vadd.f32 %v1618_v24, %v1548_v13  ;;  %v1549_v34 = vadd.f32 %v1533_v30, %v1463_v35  ;;  %v1534_v1 = vmul.f32 %v2017_v47, %v3349_v44  ;;  %v1719_v39 = vadd.f32 %v1703_v37, %v1633_v19 }
 0x10c   : > { %2061 = vst [vmem:[%s2722_s23 + $0x158] sm:$0xff] %v1718_v12  ;;  %v1620_v2 = vmul.f32 %v2033_v48, %v3373_v51  ;;  %v1706_v59 = vmul.f32 %v2049_v60, %v3376_v57 }
 0x10d   : > { %v1720_v52 = vadd.f32 %v1704_v50, %v1634_v55  ;;  %v1635_v7 = vadd.f32 %v1619_v18, %v1549_v34  ;;  %v1550_v45 = vadd.f32 %v1534_v1, %v1464_v27  ;;  %2062 = vst [vmem:[%s2722_s23 + $0x160] sm:$0xff] %v1719_v39 }
 0x10f   : > { %2063 = vst [vmem:[%s2722_s23 + $0x168] sm:$0xff] %v1720_v52  ;;  %v1721_v8 = vadd.f32 %v1705_v0, %v1635_v7  ;;  %v1636_v44 = vadd.f32 %v1620_v2, %v1550_v45 }
 0x111   : > { %2064 = vst [vmem:[%s2722_s23 + $0x170] sm:$0xff] %v1721_v8  ;;  %v1722_v51 = vadd.f32 %v1706_v59, %v1636_v44 }
 0x113   : > { %2065 = vst [vmem:[%s2722_s23 + $0x178] sm:$0xff] %v1722_v51 }
 0x114   : > { %2191 = shalt.err (!%p2188_p5)
}
 0x115   : > { %s2192_s5 = scalar_lea.hbm %s3485_s28, 6144  ;;  %s2196_s14 = scalar_lea.hbm %s3535_s2, 12288 }
 0x116   : > { %p2193_p7 = scmp.ne.s32.totalorder %s3485_s28, %s2192_s5  ;;  %p2197_p12 = scmp.lt.u32.totalorder %s3485_s28, %s3535_s2 }
 0x117   : > { %p2198_p13 = scmp.lt.u32.totalorder %s2196_s14, %s2192_s5  ;;  %p2200_p1 = scmp.lt.u32.totalorder %s2192_s5, %s3485_s28 }
 0x118   : > { %p2194_p10 = pnand %p2193_p7, %p2303_p6 }
 0x119   : > { %p2199_p0 = por %p2198_p13, %p2197_p12 }
 0x11a   : > { %p2195_p11 = pneg %p2194_p10 }
 0x11b   : > { %p2201_p2 = por %p2200_p1, %p2199_p0 }
 0x11d   : > { %p2202_p3 = pnand %p2201_p2, %p2195_p11 }
 0x11f   : > { %2205 = shalt.err (!%p2202_p3)
}
 0x120   : > { %s2243_s19 = smov 512   ;;  %s2244_s22 = smov 1024  }
 0x121   : > { %s2245_s23 = smov 32  }
 0x122   : > { %2076 = dma.vmem_to_hbm [thread:$0]  (%p2303_p6), %s3487_s25, 6144, %s3485_s28, %s1741_s13, %s2243_s19, %s2244_s22, %s2245_s23  }
 0x123 PF: > { %s1769_s24 = sand.u32 1, %s2228_s9   ;;  %p2079_p4 = pnand %p1842_p9, %p2307_p8 }
 0x124   : > { %s1770_s26 = scalar_lea.sflag [#allocation5], %s1769_s24 }
 0x125   : > { %2223 = dma.done.wait (!%p2079_p4), %s1770_s26, 6144  }
 0x126   : > { %2225 = vsyncadd (!%p2079_p4), %s1770_s26, 4294961152  ;;  %p12_p5 = scmp.ge.s32.totalorder %s2284_s15, 4   ;;  %s3732_s9 = smov %s2232_s10 }
 0x127   : > { %s3733_s10 = smov %s2236_s11  ;;  %s3734_s11 = smov %s2297_s18 }
 0x128   : > { %s3735_s12 = smov %s2284_s15  ;;  %14 = sbr.rel (!%p12_p5) target bundleno = 3 (0x3), region = 129 }
 0x12f   :  { %1775 = vsyncpa [#allocation5], 1 }
 0x130   :  { %1777 = vsyncpa [#allocation5 + $0x1], 1 }

</bundles_post_ra>
